<compile_context>
chip_gen: v7x
topology: tpu7x:2x2x1
jax: 0.10.0
libtpu: 0.0.40
codegen_flags: <defaults>
</compile_context>

<pallas_src>
import math

import jax
import jax.numpy as jnp
from jax import lax
from jax.experimental import pallas as pl
from jax.experimental.pallas import tpu as pltpu


def _mha_attn_kernel(q_ref, k_ref, v_ref, wo_ref, bo_ref,
                     out_ref, attn_ref, acc_ref):
    """One (batch, query-tile, head) grid step.

    q_ref:   (1, 1, block_q, dph) bf16, already scaled by 1/sqrt(dph)
    k_ref:   (1, 1, Sk, dph)      bf16
    v_ref:   (1, 1, Sk, dph)      bf16
    wo_ref:  (1, dph, D)          bf16 (head-h slice of head-major Wo)
    bo_ref:  (1, D)               f32
    out_ref: (1, block_q, D)      resident across the head axis
    attn_ref:(1, block_q, Sk)     resident across the head axis (head 0 only)
    acc_ref: (block_q, D)         f32 VMEM accumulator for the final linear
    """
    h = pl.program_id(2)

    q = q_ref[0, 0]          # (block_q, dph)
    k = k_ref[0, 0]          # (Sk, dph)
    v = v_ref[0, 0]          # (Sk, dph)

    # scores = q @ k^T : contract the dph axis directly (no explicit transpose)
    s = lax.dot_general(q, k, (((1,), (1,)), ((), ())),
                        preferred_element_type=jnp.float32)      # (block_q, Sk)
    # TODO(synk): optional attention mask (masked_fill with -1e18) not implemented.

    # Numerically-stable softmax over the key axis (matches nn.Softmax).
    s = s - jnp.max(s, axis=-1, keepdims=True)
    e = jnp.exp(s)
    # approx=False: top_attn is a user-visible output -> rows should sum to 1.
    a = e * pl.reciprocal(jnp.sum(e, axis=-1, keepdims=True), approx=False)

    @pl.when(h == 0)
    def _():
        # top_attn = head-0 attention; seed the accumulator with the bias.
        attn_ref[0] = a.astype(attn_ref.dtype)
        acc_ref[...] = jnp.broadcast_to(bo_ref[...], acc_ref.shape)

    # TODO(synk): attention dropout is identity in eval mode; training-mode
    # stochastic dropout (pltpu.prng_*) is not implemented.
    ctx_h = jnp.dot(a.astype(v.dtype), v,
                    preferred_element_type=jnp.float32)           # (block_q, dph)

    # Partial final linear for this head: summing ctx_h @ Wo[h] over heads is
    # exactly the unshape(context) @ Wo^T contraction of the PyTorch module.
    acc_ref[...] += jnp.dot(ctx_h.astype(wo_ref.dtype), wo_ref[0],
                            preferred_element_type=jnp.float32)

    @pl.when(h == pl.num_programs(2) - 1)
    def _():
        out_ref[0] = acc_ref[...].astype(out_ref.dtype)


def multi_headed_attention(key, value, query, params, num_heads, *,
                           block_q=256, compute_dtype=jnp.bfloat16,
                           out_dtype=None, attn_dtype=jnp.bfloat16):
    """key/value: (B, Sk, D); query: (B, Sq, D). Returns (output, top_attn)."""
    B, Sk, D = key.shape
    Sq = query.shape[1]
    assert D % num_heads == 0
    dph = D // num_heads
    block_q = min(block_q, Sq)
    assert Sq % block_q == 0, "query_len must be divisible by block_q"
    out_dtype = compute_dtype if out_dtype is None else out_dtype

    scale = 1.0 / math.sqrt(dph)

    # ---- One-time parameter / projection prep (XLA side, out of the hot loop).
    # PyTorch [out, in] weights -> [in, out]; bf16 operands, f32 accumulation.
    wk_t = params["wk"].T.astype(compute_dtype)
    wv_t = params["wv"].T.astype(compute_dtype)
    wq_t = params["wq"].T.astype(compute_dtype)
    bk = params["bk"].astype(jnp.float32).reshape(1, D)
    bv = params["bv"].astype(jnp.float32).reshape(1, D)
    bq = params["bq"].astype(jnp.float32).reshape(1, D)
    # Head-major final-linear weight: (H, dph, D); bias stays f32.
    wo_hm = params["wo"].T.reshape(num_heads, dph, D).astype(compute_dtype)
    bo = params["bo"].astype(jnp.float32).reshape(1, D)

    def to_heads(x_f32, S):
        # (B, S, D) f32 -> head-major (B, H, S, dph) compute_dtype
        x = x_f32.reshape(B, S, num_heads, dph).transpose(0, 2, 1, 3)
        return x.astype(compute_dtype)

    if key is value and value is query:
        # Self-attention: fused (D, 3D) QKV projection -> one wide MXU pass.
        w_qkv = jnp.concatenate([wk_t, wv_t, wq_t], axis=1)       # (D, 3D)
        b_qkv = jnp.concatenate([bk, bv, bq], axis=1)             # (1, 3D)
        proj = jnp.dot(query.astype(compute_dtype), w_qkv,
                       preferred_element_type=jnp.float32) + b_qkv
        k_p, v_p, q_p = jnp.split(proj, 3, axis=-1)
    else:
        k_p = jnp.dot(key.astype(compute_dtype), wk_t,
                      preferred_element_type=jnp.float32) + bk
        v_p = jnp.dot(value.astype(compute_dtype), wv_t,
                      preferred_element_type=jnp.float32) + bv
        q_p = jnp.dot(query.astype(compute_dtype), wq_t,
                      preferred_element_type=jnp.float32) + bq

    k_hm = to_heads(k_p, Sk)                          # (B, H, Sk, dph)
    v_hm = to_heads(v_p, Sk)                          # (B, H, Sk, dph)
    q_hm = to_heads(q_p * scale, Sq)                  # (B, H, Sq, dph), pre-scaled

    grid = (B, Sq // block_q, num_heads)              # head axis = reduction

    q_spec = pl.BlockSpec((1, 1, block_q, dph), lambda b, qi, h: (b, h, qi, 0))
    kv_spec = pl.BlockSpec((1, 1, Sk, dph), lambda b, qi, h: (b, h, 0, 0))
    wo_spec = pl.BlockSpec((1, dph, D), lambda b, qi, h: (h, 0, 0))
    bo_spec = pl.BlockSpec((1, D), lambda b, qi, h: (0, 0))

    out_shape = (
        jax.ShapeDtypeStruct((B, Sq, D), out_dtype),
        jax.ShapeDtypeStruct((B, Sq, Sk), attn_dtype),
    )
    out_specs = (
        pl.BlockSpec((1, block_q, D), lambda b, qi, h: (b, qi, 0)),
        pl.BlockSpec((1, block_q, Sk), lambda b, qi, h: (b, qi, 0)),
    )

    # TODO(synk): for very long key_len, tile Sk with an online-softmax
    # (flash-style) inner loop instead of a full (Sk, dph) K/V block.
    return pl.pallas_call(
        _mha_attn_kernel,
        grid=grid,
        in_specs=[q_spec, kv_spec, kv_spec, wo_spec, bo_spec],
        out_specs=out_specs,
        out_shape=out_shape,
        scratch_shapes=[pltpu.VMEM((block_q, D), jnp.float32)],
        compiler_params=pltpu.CompilerParams(
            dimension_semantics=("parallel", "parallel", "arbitrary"),
            vmem_limit_bytes=64 * 1024 * 1024),
    )(q_hm, k_hm, v_hm, wo_hm, bo)


def _reference(key, value, query, params, num_heads):
    """Pure-JAX f32 reference mirroring the PyTorch forward."""
    B, Sk, D = key.shape
    Sq = query.shape[1]
    dph = D // num_heads

    def lin(x, w, b):
        return x @ w.T + b[0]

    def shape_heads(x, S):
        return x.reshape(B, S, num_heads, dph).transpose(0, 2, 1, 3)  # (B,H,S,dph)

    k_up = shape_heads(lin(key, params["wk"], params["bk"]), Sk)
    v_up = shape_heads(lin(value, params["wv"], params["bv"]), Sk)
    q_up = shape_heads(lin(query, params["wq"], params["bq"]), Sq) / math.sqrt(dph)
    scores = jnp.einsum("bhqd,bhkd->bhqk", q_up, k_up)
    attn = jax.nn.softmax(scores, axis=-1)
    ctx = jnp.einsum("bhqk,bhkd->bhqd", attn, v_up)
    ctx = ctx.transpose(0, 2, 1, 3).reshape(B, Sq, D)
    out = ctx @ params["wo"].T + params["bo"][0]
    return out, attn[:, 0, :, :]


if __name__ == "__main__":
    # Lane-dense small shapes (D, Sk multiples of 128); query_len = 2*block_q
    # exercises the query-tile grid axis.
    num_heads = 4
    model_dim = 128
    batch = 2
    key_len = 128
    query_len = 256

    root = jax.random.PRNGKey(0)
    keys = jax.random.split(root, 12)

    bound = 1.0 / math.sqrt(model_dim)  # PyTorch nn.Linear default init scale
    def init_w(k):
        return jax.random.uniform(k, (model_dim, model_dim), jnp.float32, -bound, bound)
    def init_b(k):
        return jax.random.uniform(k, (1, model_dim), jnp.float32, -bound, bound)

    params = {
        "wk": init_w(keys[0]), "bk": init_b(keys[1]),
        "wv": init_w(keys[2]), "bv": init_b(keys[3]),
        "wq": init_w(keys[4]), "bq": init_b(keys[5]),
        "wo": init_w(keys[6]), "bo": init_b(keys[7]),
    }

    key_in = jax.random.normal(keys[8], (batch, key_len, model_dim), jnp.float32)
    value_in = jax.random.normal(keys[9], (batch, key_len, model_dim), jnp.float32)
    query_in = jax.random.normal(keys[10], (batch, query_len, model_dim), jnp.float32)

    # ---- Cross-attention path (separate K/V/Q projections).
    out, top_attn = multi_headed_attention(key_in, value_in, query_in, params,
                                           num_heads, block_q=128)
    out = jax.block_until_ready(out)
    top_attn = jax.block_until_ready(top_attn)

    ref_out, ref_attn = _reference(key_in, value_in, query_in, params, num_heads)
    assert out.shape == (batch, query_len, model_dim)
    assert top_attn.shape == (batch, query_len, key_len)
    # bf16 operands / f32 accumulation vs f32 reference -> loose tolerance.
    assert jnp.allclose(out.astype(jnp.float32), ref_out, atol=2e-2, rtol=2e-2)
    assert jnp.allclose(top_attn.astype(jnp.float32), ref_attn, atol=2e-2, rtol=2e-2)

    # ---- Self-attention path (exercises the fused (D, 3D) QKV projection).
    x_in = jax.random.normal(keys[11], (batch, key_len, model_dim), jnp.float32)
    out_s, attn_s = multi_headed_attention(x_in, x_in, x_in, params,
                                           num_heads, block_q=128)
    out_s = jax.block_until_ready(out_s)
    attn_s = jax.block_until_ready(attn_s)
    ref_out_s, ref_attn_s = _reference(x_in, x_in, x_in, params, num_heads)
    assert jnp.allclose(out_s.astype(jnp.float32), ref_out_s, atol=2e-2, rtol=2e-2)
    assert jnp.allclose(attn_s.astype(jnp.float32), ref_attn_s, atol=2e-2, rtol=2e-2)

    print("KERNEL_OK")
</pallas_src>

<mosaic_0001>
module attributes {stable_mosaic.version = 11 : i64} {
  func.func @_mha_attn_kernel(%arg0: i32, %arg1: i32, %arg2: i32, %arg3: memref<1x1x128x32xbf16, #tpu.memory_space<vmem>>, %arg4: memref<1x1x128x32xbf16, #tpu.memory_space<vmem>>, %arg5: memref<1x1x128x32xbf16, #tpu.memory_space<vmem>>, %arg6: memref<1x32x128xbf16, #tpu.memory_space<vmem>>, %arg7: memref<1x128xf32, #tpu.memory_space<vmem>>, %arg8: memref<1x128x128xbf16, #tpu.memory_space<vmem>>, %arg9: memref<1x128x128xbf16, #tpu.memory_space<vmem>>, %arg10: memref<128x128xf32, #tpu.memory_space<vmem>>) attributes {dimension_semantics = [#tpu.dimension_semantics<parallel>, #tpu.dimension_semantics<parallel>, #tpu.dimension_semantics<arbitrary>], iteration_bounds = array<i64: 2, 2, 4>, scalar_prefetch = 0 : i64, scratch_operands = 1 : i64, tpu.core_type = #tpu.core_type<tc>, window_params = [{transform_indices = @transform_0, window_bounds = array<i64: 1, 1, 128, 32>}, {transform_indices = @transform_1, window_bounds = array<i64: 1, 1, 128, 32>}, {transform_indices = @transform_2, window_bounds = array<i64: 1, 1, 128, 32>}, {transform_indices = @transform_3, window_bounds = array<i64: 1, 32, 128>}, {pipeline_mode = #tpu.pipeline_mode<synchronous>, transform_indices = @transform_4, window_bounds = array<i64: 1, 128>}, {transform_indices = @transform_5, window_bounds = array<i64: 1, 128, 128>}, {transform_indices = @transform_6, window_bounds = array<i64: 1, 128, 128>}]} {
    %c0 = arith.constant 0 : index
    %c0_0 = arith.constant 0 : index
    %c0_1 = arith.constant 0 : index
    %c0_2 = arith.constant 0 : index
    %0 = vector.load %arg3[%c0, %c0_0, %c0_1, %c0_2] : memref<1x1x128x32xbf16, #tpu.memory_space<vmem>>, vector<1x1x128x32xbf16>
    %1 = vector.shape_cast %0 : vector<1x1x128x32xbf16> to vector<128x32xbf16>
    %c0_3 = arith.constant 0 : index
    %c0_4 = arith.constant 0 : index
    %c0_5 = arith.constant 0 : index
    %c0_6 = arith.constant 0 : index
    %2 = vector.load %arg4[%c0_3, %c0_4, %c0_5, %c0_6] : memref<1x1x128x32xbf16, #tpu.memory_space<vmem>>, vector<1x1x128x32xbf16>
    %3 = vector.shape_cast %2 : vector<1x1x128x32xbf16> to vector<128x32xbf16>
    %c0_7 = arith.constant 0 : index
    %c0_8 = arith.constant 0 : index
    %c0_9 = arith.constant 0 : index
    %c0_10 = arith.constant 0 : index
    %4 = vector.load %arg5[%c0_7, %c0_8, %c0_9, %c0_10] : memref<1x1x128x32xbf16, #tpu.memory_space<vmem>>, vector<1x1x128x32xbf16>
    %5 = vector.shape_cast %4 : vector<1x1x128x32xbf16> to vector<128x32xbf16>
    %cst = arith.constant dense<0.000000e+00> : vector<128x128xf32>
    %6 = tpu.matmul %1, %3, %cst {dimension_numbers = #tpu.dot_dimension_numbers<[1], [1], [0], [0], [0, 0, 1, 0], [], []>} : vector<128x32xbf16>, vector<128x32xbf16>, vector<128x128xf32> -> vector<128x128xf32>
    %cst_11 = arith.constant dense<0xFF800000> : vector<128xf32>
    %7 = vector.multi_reduction <maximumf>, %6, %cst_11 [1] : vector<128x128xf32> to vector<128xf32>
    %8 = vector.shape_cast %7 : vector<128xf32> to vector<128x1xf32>
    %9 = vector.broadcast %8 : vector<128x1xf32> to vector<128x128xf32>
    %10 = arith.subf %6, %9 : vector<128x128xf32>
    %11 = math.exp %10 : vector<128x128xf32>
    %cst_12 = arith.constant dense<0.000000e+00> : vector<128xf32>
    %12 = vector.multi_reduction <add>, %11, %cst_12 [1] : vector<128x128xf32> to vector<128xf32>
    %13 = vector.shape_cast %12 : vector<128xf32> to vector<128x1xf32>
    %14 = tpu.reciprocal %13 : vector<128x1xf32> -> vector<128x1xf32>
    %15 = vector.broadcast %14 : vector<128x1xf32> to vector<128x128xf32>
    %16 = arith.mulf %11, %15 : vector<128x128xf32>
    %c0_i32 = arith.constant 0 : i32
    %17 = arith.cmpi eq, %arg2, %c0_i32 : i32
    %18 = arith.extui %17 : i1 to i32
    %c0_i32_13 = arith.constant 0 : i32
    %19 = arith.cmpi ne, %18, %c0_i32_13 : i32
    scf.if %19 {
      %32 = arith.truncf %16 : vector<128x128xf32> to vector<128x128xbf16>
      %c0_24 = arith.constant 0 : index
      %c0_25 = arith.constant 0 : index
      %c0_26 = arith.constant 0 : index
      %33 = vector.load %arg9[%c0_24, %c0_25, %c0_26] : memref<1x128x128xbf16, #tpu.memory_space<vmem>>, vector<1x128x128xbf16>
      %34 = vector.shape_cast %33 : vector<1x128x128xbf16> to vector<128x128xbf16>
      %35 = vector.shape_cast %32 : vector<128x128xbf16> to vector<1x128x128xbf16>
      tpu.vector_store %arg9[%c0_24, %c0_25, %c0_26], %35 {strides = array<i32>} : memref<1x128x128xbf16, #tpu.memory_space<vmem>>, vector<1x128x128xbf16>,
      %c0_27 = arith.constant 0 : index
      %c0_28 = arith.constant 0 : index
      %36 = vector.load %arg7[%c0_27, %c0_28] : memref<1x128xf32, #tpu.memory_space<vmem>>, vector<1x128xf32>
      %37 = vector.shape_cast %36 : vector<1x128xf32> to vector<1x128xf32>
      %38 = vector.broadcast %37 : vector<1x128xf32> to vector<128x128xf32>
      %c0_29 = arith.constant 0 : index
      %c0_30 = arith.constant 0 : index
      %39 = vector.load %arg10[%c0_29, %c0_30] : memref<128x128xf32, #tpu.memory_space<vmem>>, vector<128x128xf32>
      tpu.vector_store %arg10[%c0_29, %c0_30], %38 {strides = array<i32>} : memref<128x128xf32, #tpu.memory_space<vmem>>, vector<128x128xf32>,
    } else {
    }
    %20 = arith.truncf %16 : vector<128x128xf32> to vector<128x128xbf16>
    %cst_14 = arith.constant dense<0.000000e+00> : vector<128x32xf32>
    %21 = tpu.matmul %20, %5, %cst_14 {dimension_numbers = #tpu.dot_dimension_numbers<[1], [0], [0], [1], [0, 0, 1, 1], [], []>} : vector<128x128xbf16>, vector<128x32xbf16>, vector<128x32xf32> -> vector<128x32xf32>
    %c0_15 = arith.constant 0 : index
    %c0_16 = arith.constant 0 : index
    %22 = vector.load %arg10[%c0_15, %c0_16] : memref<128x128xf32, #tpu.memory_space<vmem>>, vector<128x128xf32>
    %23 = arith.truncf %21 : vector<128x32xf32> to vector<128x32xbf16>
    %c0_17 = arith.constant 0 : index
    %c0_18 = arith.constant 0 : index
    %c0_19 = arith.constant 0 : index
    %24 = vector.load %arg6[%c0_17, %c0_18, %c0_19] : memref<1x32x128xbf16, #tpu.memory_space<vmem>>, vector<1x32x128xbf16>
    %25 = vector.shape_cast %24 : vector<1x32x128xbf16> to vector<32x128xbf16>
    %cst_20 = arith.constant dense<0.000000e+00> : vector<128x128xf32>
    %26 = tpu.matmul %23, %25, %cst_20 {dimension_numbers = #tpu.dot_dimension_numbers<[1], [0], [0], [1], [0, 0, 1, 1], [], []>} : vector<128x32xbf16>, vector<32x128xbf16>, vector<128x128xf32> -> vector<128x128xf32>
    %27 = arith.addf %22, %26 : vector<128x128xf32>
    %c0_21 = arith.constant 0 : index
    %c0_22 = arith.constant 0 : index
    %28 = vector.load %arg10[%c0_21, %c0_22] : memref<128x128xf32, #tpu.memory_space<vmem>>, vector<128x128xf32>
    tpu.vector_store %arg10[%c0_21, %c0_22], %27 {strides = array<i32>} : memref<128x128xf32, #tpu.memory_space<vmem>>, vector<128x128xf32>,
    %c3_i32 = arith.constant 3 : i32
    %29 = arith.cmpi eq, %arg2, %c3_i32 : i32
    %30 = arith.extui %29 : i1 to i32
    %c0_i32_23 = arith.constant 0 : i32
    %31 = arith.cmpi ne, %30, %c0_i32_23 : i32
    scf.if %31 {
      %c0_24 = arith.constant 0 : index
      %c0_25 = arith.constant 0 : index
      %32 = vector.load %arg10[%c0_24, %c0_25] : memref<128x128xf32, #tpu.memory_space<vmem>>, vector<128x128xf32>
      %33 = arith.truncf %32 : vector<128x128xf32> to vector<128x128xbf16>
      %c0_26 = arith.constant 0 : index
      %c0_27 = arith.constant 0 : index
      %c0_28 = arith.constant 0 : index
      %34 = vector.load %arg8[%c0_26, %c0_27, %c0_28] : memref<1x128x128xbf16, #tpu.memory_space<vmem>>, vector<1x128x128xbf16>
      %35 = vector.shape_cast %34 : vector<1x128x128xbf16> to vector<128x128xbf16>
      %36 = vector.shape_cast %33 : vector<128x128xbf16> to vector<1x128x128xbf16>
      tpu.vector_store %arg8[%c0_26, %c0_27, %c0_28], %36 {strides = array<i32>} : memref<1x128x128xbf16, #tpu.memory_space<vmem>>, vector<1x128x128xbf16>,
    } else {
    }
    return
  }
  func.func @transform_0(%arg0: i32, %arg1: i32, %arg2: i32) -> (i32, i32, i32, i32) {
    %c0_i32 = arith.constant 0 : i32
    %c0_i32_0 = arith.constant 0 : i32
    return %arg0, %arg2, %arg1, %c0_i32 : i32, i32, i32, i32
  }
  func.func @transform_1(%arg0: i32, %arg1: i32, %arg2: i32) -> (i32, i32, i32, i32) {
    %c0_i32 = arith.constant 0 : i32
    %c0_i32_0 = arith.constant 0 : i32
    %c0_i32_1 = arith.constant 0 : i32
    return %arg0, %arg2, %c0_i32, %c0_i32_0 : i32, i32, i32, i32
  }
  func.func @transform_2(%arg0: i32, %arg1: i32, %arg2: i32) -> (i32, i32, i32, i32) {
    %c0_i32 = arith.constant 0 : i32
    %c0_i32_0 = arith.constant 0 : i32
    %c0_i32_1 = arith.constant 0 : i32
    return %arg0, %arg2, %c0_i32, %c0_i32_0 : i32, i32, i32, i32
  }
  func.func @transform_3(%arg0: i32, %arg1: i32, %arg2: i32) -> (i32, i32, i32) {
    %c0_i32 = arith.constant 0 : i32
    %c0_i32_0 = arith.constant 0 : i32
    %c0_i32_1 = arith.constant 0 : i32
    return %arg2, %c0_i32, %c0_i32_0 : i32, i32, i32
  }
  func.func @transform_4(%arg0: i32, %arg1: i32, %arg2: i32) -> (i32, i32) {
    %c0_i32 = arith.constant 0 : i32
    %c0_i32_0 = arith.constant 0 : i32
    %c0_i32_1 = arith.constant 0 : i32
    return %c0_i32, %c0_i32_0 : i32, i32
  }
  func.func @transform_5(%arg0: i32, %arg1: i32, %arg2: i32) -> (i32, i32, i32) {
    %c0_i32 = arith.constant 0 : i32
    %c0_i32_0 = arith.constant 0 : i32
    return %arg0, %arg1, %c0_i32 : i32, i32, i32
  }
  func.func @transform_6(%arg0: i32, %arg1: i32, %arg2: i32) -> (i32, i32, i32) {
    %c0_i32 = arith.constant 0 : i32
    %c0_i32_0 = arith.constant 0 : i32
    return %arg0, %arg1, %c0_i32 : i32, i32, i32
  }
}

</mosaic_0001>

<bundles_post_ra>
// kernel: tpu_custom_call.1
= control target key start
LH: loop header
LB: loop body
LE: loop exit
PB: predicated region body
PF: predicated region fallthrough
CT: control target
= control target key end

     0   :  { %s3635_s0 = inlined_call_operand.hbm [shape: bf16[2,4,256,32], index: 0, kind: input, shape index: {}]   ;;  %s3636_s1 = inlined_call_operand.hbm [shape: bf16[2,4,128,32], index: 1, kind: input, shape index: {}]   ;;  %s3637_s2 = inlined_call_operand.hbm [shape: bf16[2,4,128,32], index: 2, kind: input, shape index: {}]   ;;  %s3638_s3 = inlined_call_operand.hbm [shape: bf16[4,32,128], index: 3, kind: input, shape index: {}]   ;;  %s3639_s4 = inlined_call_operand.hbm [shape: f32[1,128], index: 4, kind: input, shape index: {}]   ;;  %s3640_s5 = inlined_call_operand.hbm [shape: bf16[2,256,128], index: 5, kind: output, shape index: {0}]   ;;  %s3641_s6 = inlined_call_operand.hbm [shape: bf16[2,256,128], index: 6, kind: output, shape index: {1}]  }
   0x1   :  { %3681 = sst [smem:[#allocation41_spill]] %s3635_s0 }
   0x2   :  { %3682 = sst [smem:[#allocation42_spill]] %s3636_s1 }
   0x3   :  { %3683 = sst [smem:[#allocation43_spill]] %s3638_s3 }
   0x4   :  { %3684 = sst [smem:[#allocation44_spill]] %s3639_s4 }
   0x5   :  { %3685 = sst [smem:[#allocation45_spill]] %s3640_s5 }
   0x6   :  { %3686 = sst [smem:[#allocation46_spill]] %s3641_s6 }
   0x7   :  { %12 = vsyncpa [#allocation4], 0 }
   0x8   :  { %14 = vsyncpa [#allocation4 + $0x1], 0 }
   0x9   :  { %15 = vsyncpa [#allocation7], 0 }
   0xa   :  { %17 = vsyncpa [#allocation7 + $0x1], 0 }
   0xb   :  { %18 = vsyncpa [#allocation10], 0 }
   0xc   :  { %20 = vsyncpa [#allocation10 + $0x1], 0 }
   0xd   :  { %21 = vsyncpa [#allocation5], 0 }
   0xe   :  { %23 = vsyncpa [#allocation5 + $0x1], 0 }
   0xf   :  { %24 = vsyncpa [#allocation14], 0 }
  0x10   :  { %26 = vsyncpa [#allocation14 + $0x1], 0  ;;  %s2763_s21 = smov 0   ;;  %s2765_s22 = smov 0  }
  0x11   :  { %s2767_s23 = smov 0   ;;  %s2769_s24 = smov 0  }
  0x12   :  { %s2771_s25 = smov 0   ;;  %s2773_s26 = smov 0  }
  0x13   :  { %s2775_s27 = smov 0   ;;  %s2777_s28 = smov 0  }
  0x14   :  { %s2779_s29 = smov 0   ;;  %s2781_s30 = smov 0  }
  0x15   :  { %s2783_s7 = smov 0   ;;  %s2785_s8 = smov 0  }
  0x16   :  { %s2787_s9 = smov 0   ;;  %s2789_s10 = smov 0  }
  0x17   :  { %s2791_s11 = smov 0   ;;  %s2793_s12 = smov 0  }
  0x18   :  { %s2795_s13 = smov 0   ;;  %s2797_s14 = smov 0  }
  0x19   :  { %s2799_s15 = smov 0  }
  0x1a LB: > { %3687 = sst [smem:[#allocation21_spill]] %s2643_s21  ;;  %s2853_s16 = sadd.s32 4294967295, %s2715_s15   ;;  %s2715_s15 = sphi %s2799_s15, %s32_s15   ;;  %s2711_s14 = sphi %s2797_s14, %s3786_s14   ;;  %s2707_s13 = sphi %s2795_s13, %s3785_s13   ;;  %s2703_s12 = sphi %s2793_s12, %s3784_s12   ;;  %s2699_s11 = sphi %s2791_s11, %s3771_s11   ;;  %s2695_s10 = sphi %s2789_s10, %s3770_s10   ;;  %s2691_s9 = sphi %s2787_s9, %s3783_s9   ;;  %s2687_s8 = sphi %s2785_s8, %s3782_s8   ;;  %s2683_s7 = sphi %s2783_s7, %s3781_s7   ;;  %s2679_s30 = sphi %s2781_s30, %s3769_s30   ;;  %s2675_s29 = sphi %s2779_s29, %s3780_s29   ;;  %s2671_s28 = sphi %s2777_s28, %s3779_s28   ;;  %s2667_s27 = sphi %s2775_s27, %s3768_s27   ;;  %s2663_s26 = sphi %s2773_s26, %s3778_s26   ;;  %s2659_s25 = sphi %s2771_s25, %s3777_s25   ;;  %s2655_s24 = sphi %s2769_s24, %s3767_s24   ;;  %s2651_s23 = sphi %s2767_s23, %s3776_s23   ;;  %s2647_s22 = sphi %s2765_s22, %s3774_s22   ;;  %s2643_s21 = sphi %s2763_s21, %s3766_s21  }
  0x1b   : > { %3688 = sst [smem:[#allocation22_spill]] %s2647_s22  ;;  %s1678_s17 = sadd.s32 4294967294, %s2715_s15  }
  0x1c   : > { %3689 = sst [smem:[#allocation23_spill]] %s2659_s25  ;;  %p75_p0 = scmp.ne.s32.totalorder %s2683_s7, %s2679_s30 }
  0x1d   : > { %3690 = sst [smem:[#allocation24_spill]] %s2671_s28  ;;  %p3651_p1 = scmp.eq.s32.totalorder %s2853_s16, 0 }
  0x1e   : > { %3691 = sst [smem:[#allocation25_spill]] %s2683_s7  ;;  %p103_p2 = scmp.ne.s32.totalorder %s2671_s28, %s2667_s27 }
  0x1f   : > { %3692 = sst [smem:[#allocation26_spill]] %s2691_s9  ;;  %p157_p3 = scmp.ne.s32.totalorder %s2659_s25, %s2655_s24 }
  0x20   : > { %3693 = sst [smem:[#allocation27_spill]] %s2695_s10  ;;  %p2862_p4 = por %p3651_p1, %p75_p0 }
  0x21   : > { %3694 = sst [smem:[#allocation28_spill]] %s2699_s11  ;;  %p2869_p5 = por %p103_p2, %p3651_p1 }
  0x22   : > { %3695 = sst [smem:[#allocation29_spill]] %s2707_s13  ;;  %p2875_p6 = por %p157_p3, %p3651_p1 }
  0x23   : > { %3696 = sst [smem:[#allocation30_spill]] %s2711_s14  ;;  %p203_p7 = scmp.ne.s32.totalorder %s2651_s23, %s2647_s22 }
  0x24   : > { %3697 = sst [smem:[#allocation31_spill]] %s2853_s16  ;;  %p204_p8 = scmp.eq.s32.totalorder %s2853_s16, 15 }
  0x25   : > { %s3698_s18 = scalar_select %p2862_p4, 1, 0 }
  0x26   : > { %s3700_s20 = scalar_select %p2869_p5, 1, 0 }
  0x27   : > { %3699 = sst [smem:[#allocation32_spill]] %s3698_s18  ;;  %p209_p9 = scmp.ne.s32.totalorder %s2647_s22, %s2643_s21 }
  0x28   : > { %3701 = sst [smem:[#allocation33_spill]] %s3700_s20  ;;  %p210_p10 = scmp.eq.s32.totalorder %s1678_s17, 15 }
  0x29   : > { %s3702_s6 = scalar_select %p2875_p6, 1, 0 }
  0x2a   : > { %p2884_p11 = por %p204_p8, %p203_p7  ;;  %p1679_p12 = scmp.ge.s32.totalorder %s2715_s15, 1 }
  0x2b   : > { %3703 = sst [smem:[#allocation34_spill]] %s3702_s6  ;;  %p2889_p13 = por %p210_p10, %p209_p9 }
  0x2c   : > { %s3704_s24 = scalar_select %p2884_p11, 1, 0 }
  0x2d   : > { %s3706_s27 = scalar_select %p2889_p13, 1, 0 }
  0x2e   : > { %3705 = sst [smem:[#allocation35_spill]] %s3704_s24  ;;  %p245_p0 = scmp.lt.s32.totalorder %s2715_s15, 17 }
  0x2f   : > { %3707 = sst [smem:[#allocation36_spill]] %s3706_s27  ;;  %s2717_s19 = smov [#allocation11]  }
  0x30   : > { %p2894_p2 = pnand %p1679_p12, %p245_p0  ;;  %s258_s5 = sshll.u32 %s2717_s19, 4  ;;  %s259_s5 = int_to_ptr.vmem [resolvable:$true] %s258_s5 }
  0x31   : > { %s3711_s4 = sld [smem:[#allocation44_spill]] }
  0x32   : > { %s3708_s30 = scalar_select %p2894_p2, 1, 0 }
  0x33   : > { %p2070_p3 = pneg %p2894_p2 }
  0x34   : > { %3709 = sst [smem:[#allocation37_spill]] %s3708_s30 }
  0x35   : > { %p2902_p7 = pnand %p2070_p3, %p3651_p1 }
  0x37   : > { %s2337_s11 = scalar_lea.hbm %s3711_s4, 16  ;;  %p2339_p9 = pneg %p2902_p7 }
  0x38   : > { %p2338_p8 = scmp.ne.s32.totalorder %s3711_s4, %s2337_s11  ;;  %p2344_p0 = scmp.lt.u32.totalorder %s2337_s11, %s3711_s4 }
  0x3a   : > { %p2340_p10 = pnand %p2339_p9, %p2338_p8 }
  0x3c   : > { %p2341_p12 = pneg %p2340_p10 }
  0x3e   : > { %p2346_p3 = pnand %p2344_p0, %p2341_p12 }
  0x40   : > { %2349 = shalt.err (!%p2346_p3)
}
  0x41   : > { %s2350_s6 = scalar_lea.vmem %s259_s5, 16  ;;  %s2357_s24 = scalar_lea.vmem %s259_s5, 32 }
  0x42   : > { %p2351_p1 = scmp.ne.s32.totalorder %s259_s5, %s2350_s6  ;;  %p2358_p6 = scmp.lt.s32.totalorder %s259_s5, %s259_s5 }
  0x43   : > { %p2359_p5 = scmp.lt.s32.totalorder %s2357_s24, %s2350_s6 }
  0x44   : > { %p2353_p13 = pnand %p2351_p1, %p2339_p9 }
  0x45   : > { %p2360_p4 = por %p2359_p5, %p2358_p6 }
  0x46   : > { %p2354_p11 = pneg %p2353_p13 }
  0x48   : > { %p2361_p2 = pnand %p2360_p4, %p2354_p11 }
  0x4a   : > { %2364 = shalt.err (!%p2361_p2)
}
  0x4b   : > { %2073 = dma.hbm_to_vmem [thread:$0]  (!%p2902_p7), %s3711_s4, 16, %s259_s5, [#allocation10]  }
  0x4c   : > { %p3679_p1 = scmp.eq.s32.totalorder %s2715_s15, 0  ;;  %p97_p4 = scmp.ne.s32.totalorder %s2675_s29, %s2671_s28 }
  0x4d   : > { %p3660_p5 = scmp.lt.s32.totalorder %s2715_s15, 16  ;;  %s296_s27 = sand.u32 1, %s2675_s29  }
  0x4e   : > { %p99_p6 = por %p97_p4, %p3679_p1  ;;  %s2933_s17 = sshll.u32 %s296_s27, 6 }
  0x4f   : > { %s1688_s19 = sshll.u32 %s2703_s12, 4  ;;  %s1689_s24 = sshll.u32 %s2711_s14, 6 }
  0x50   : > { %s298_s9 = scalar_lea.vmem [#allocation6], %s2933_s17  ;;  %s304_s21 = sadd.s32 %s1689_s24, %s1688_s19 }
  0x51   : > { %s307_s10 = sshll.u32 %s298_s9, 4  ;;  %s1690_s5 = sshll.u32 %s304_s21, 6  ;;  %s2938_s10 = int_to_ptr.vmem [resolvable:$true] %s307_s10 }
  0x52   : > { %p2942_p11 = pnand %p3660_p5, %p99_p6  ;;  %s3713_s1 = sld [smem:[#allocation42_spill]] }
  0x53   : > { %s2954_s21 = scalar_lea.hbm %s3637_s2, %s1690_s5  ;;  %s3714_s19 = sand.u32 1, %s2715_s15  }
  0x54   : > { %s2958_s24 = scalar_lea.sflag [#allocation7], %s3714_s19  ;;  %p2367_p2 = pneg %p2942_p11 }
  0x58   : > { %s2949_s27 = scalar_lea.hbm %s3713_s1, %s1690_s5  ;;  %s2370_s20 = scalar_lea.hbm %s3713_s1, 8192 }
  0x59   : > { %s2365_s9 = scalar_lea.hbm %s2949_s27, 1024  ;;  %p2371_p9 = scmp.lt.u32.totalorder %s2949_s27, %s3713_s1 }
  0x5a   : > { %p2366_p13 = scmp.ne.s32.totalorder %s2949_s27, %s2365_s9  ;;  %p2372_p10 = scmp.lt.u32.totalorder %s2370_s20, %s2365_s9 }
  0x5b   : > { %p2374_p0 = scmp.lt.u32.totalorder %s2365_s9, %s2949_s27 }
  0x5c   : > { %p2368_p7 = pnand %p2367_p2, %p2366_p13  ;;  %p2373_p12 = por %p2372_p10, %p2371_p9 }
  0x5e   : > { %p2369_p8 = pneg %p2368_p7  ;;  %p2375_p3 = por %p2374_p0, %p2373_p12 }
  0x60   : > { %p2376_p4 = pnand %p2375_p3, %p2369_p8 }
  0x62   : > { %2379 = shalt.err (!%p2376_p4)
}
  0x63   : > { %s2380_s5 = scalar_lea.vmem %s2938_s10, 1024  ;;  %s2718_s19 = smov [#allocation6]  }
  0x64   : > { %p2381_p6 = scmp.ne.s32.totalorder %s2938_s10, %s2380_s5  ;;  %s2385_s4 = sshll.u32 %s2718_s19, 4  ;;  %s2386_s4 = int_to_ptr.vmem [resolvable:$false] %s2385_s4 }
  0x65   : > { %s2387_s28 = scalar_lea.vmem %s2386_s4, 2048  ;;  %p2388_p5 = scmp.lt.s32.totalorder %s2938_s10, %s2386_s4 }
  0x66   : > { %p2383_p13 = pnand %p2381_p6, %p2367_p2  ;;  %p2389_p9 = scmp.lt.s32.totalorder %s2387_s28, %s2380_s5 }
  0x68   : > { %p2384_p7 = pneg %p2383_p13  ;;  %p2390_p10 = por %p2389_p9, %p2388_p5 }
  0x6a   : > { %p2391_p12 = pnand %p2390_p10, %p2384_p7 }
  0x6c   : > { %2394 = shalt.err (!%p2391_p12)
}
  0x6d   : > { %s3661_s9 = smov 64   ;;  %s3663_s6 = smov 4  }
  0x6e   : > { %2080 = dma.hbm_to_vmem [thread:$0]  (!%p2942_p11), %s2949_s27, 1024, %s2938_s10, %s2958_s24, %s3661_s9, %s3661_s9, %s3663_s6  }
  0x6f   : > { %s321_s20 = scalar_lea.vmem [#allocation8], %s2933_s17  ;;  %s3715_s5 = sadd.s32 1, %s2703_s12 }
  0x70   : > { %s330_s11 = sshll.u32 %s321_s20, 4  ;;  %p45_p5 = scmp.ge.s32.totalorder %s3715_s5, 4  ;;  %s2990_s11 = int_to_ptr.vmem [resolvable:$true] %s330_s11 }
  0x71   : > { %s47_s19 = sadd.s32 1, %s2707_s13  ;;  %s62_s4 = sadd.s32 1, %s2687_s8 }
  0x72   : > { %s3716_s28 = smov %s3715_s5  ;;  %s3790_s19 = smov (!%p45_p5, %s47_s19), %s2707_s13 }
  0x73   : > { %s3788_s28 = smov (%p45_p5, %s3716_s28), 0  ;;  %p69_p8 = scmp.ne.s32.totalorder %s2687_s8, %s2683_s7 }
  0x74   : > { %3717 = sst [smem:[#allocation38_spill]] %s3788_s28  ;;  %s3003_s10 = ssub.s32 %s2703_s12, %s3788_s28 }
  0x75   : > { %p49_p0 = scmp.ge.s32.totalorder %s3790_s19, 2  ;;  %p3010_p4 = por %p3679_p1, %p69_p8 }
  0x76   : > { %s3673_s27 = sand.u32 1, %s2687_s8   ;;  %s3720_s20 = sadd.s32 1, %s2711_s14 }
  0x77   : > { %s3792_s19 = smov (%p49_p0, %s3790_s19), 0  ;;  %s3794_s20 = smov (!%p49_p0, %s3720_s20), %s2711_s14 }
  0x78   : > { %3719 = sst [smem:[#allocation39_spill]] %s3792_s19  ;;  %s58_s5 = ssub.s32 %s2707_s13, %s3792_s19 }
  0x79   : > { %p53_p6 = scmp.ge.s32.totalorder %s3794_s20, 2  ;;  %s1682_s9 = sshll.u32 %s3673_s27, 6 }
  0x7a   : > { %s1683_s6 = sshll.u32 %s2707_s13, 4  ;;  %s1684_s1 = sshll.u32 %s2703_s12, 5 }
  0x7b   : > { %s3796_s20 = smov (%p53_p6, %s3794_s20), 0  ;;  %s1685_s28 = sshll.u32 %s2711_s14, 7 }
  0x7c   : > { %3721 = sst [smem:[#allocation40_spill]] %s3796_s20  ;;  %s55_s16 = ssub.s32 %s2711_s14, %s3796_s20 }
  0x7d   : > { %s279_s18 = sadd.s32 %s1684_s1, %s1683_s6  ;;  %s57_s7 = sor.u32 %s3003_s10, %s55_s16 }
  0x7e   : > { %s190_s30 = sor.u32 %s58_s5, %s55_s16  ;;  %s59_s19 = sor.u32 %s58_s5, %s57_s7 }
  0x7f   : > { %p88_p13 = scmp.eq.s32.totalorder %s57_s7, 0  ;;  %p60_p7 = scmp.eq.s32.totalorder %s59_s19, 0 }
  0x80   : > { %p191_p9 = scmp.eq.s32.totalorder %s190_s30, 0  ;;  %s3722_s27 = sadd.s32 1, %s2675_s29 }
  0x81   : > { %s3035_s13 = scalar_select %p88_p13, %s2675_s29, %s3722_s27  }
  0x82   : > { %s3038_s3 = scalar_select %p60_p7, %s2687_s8, %s62_s4  }
  0x83   : > { %s3723_s25 = sadd.s32 1, %s2651_s23  ;;  %s281_s1 = sadd.s32 %s1685_s28, %s279_s18 }
  0x84   : > { %s3043_s20 = scalar_select %p191_p9, %s2651_s23, %s3723_s25  }
  0x85   : > { %s273_s6 = scalar_lea.vmem [#allocation3], %s1682_s9  ;;  %s1686_s16 = sshll.u32 %s281_s1, 6 }
  0x86   : > { %s284_s14 = sshll.u32 %s273_s6, 4  ;;  %s3724_s0 = sld [smem:[#allocation41_spill]]  ;;  %s3045_s14 = int_to_ptr.vmem [resolvable:$true] %s284_s14 }
  0x87   : > { %p3725_p10 = scmp.lt.s32.totalorder %s2715_s15, 16  ;;  %s2395_s25 = scalar_lea.hbm %s2954_s21, 1024 }
  0x88   : > { %p2396_p5 = scmp.ne.s32.totalorder %s2954_s21, %s2395_s25  ;;  %s2400_s4 = scalar_lea.hbm %s3637_s2, 8192 }
  0x89   : > { %p3056_p12 = pnand %p3725_p10, %p3010_p4  ;;  %p2401_p6 = scmp.lt.u32.totalorder %s2954_s21, %s3637_s2 }
  0x8a   : > { %p2398_p8 = pnand %p2396_p5, %p2367_p2  ;;  %p2402_p13 = scmp.lt.u32.totalorder %s2400_s4, %s2395_s25 }
  0x8b   : > { %p2404_p4 = scmp.lt.u32.totalorder %s2395_s25, %s2954_s21 }
  0x8c   : > { %s3050_s30 = scalar_lea.hbm %s3724_s0, %s1686_s16  ;;  %p2399_p0 = pneg %p2398_p8 }
  0x8d   : > { %p2403_p7 = por %p2402_p13, %p2401_p6 }
  0x8f   : > { %p2405_p9 = por %p2404_p4, %p2403_p7 }
  0x91   : > { %p2406_p10 = pnand %p2405_p9, %p2399_p0 }
  0x93   : > { %2409 = shalt.err (!%p2406_p10)
}
  0x94   : > { %s2410_s17 = scalar_lea.vmem %s2990_s11, 1024  ;;  %s2721_s1 = smov [#allocation8]  }
  0x95   : > { %p2411_p5 = scmp.ne.s32.totalorder %s2990_s11, %s2410_s17  ;;  %s2415_s6 = sshll.u32 %s2721_s1, 4  ;;  %s2416_s6 = int_to_ptr.vmem [resolvable:$false] %s2415_s6 }
  0x96   : > { %s2417_s16 = scalar_lea.vmem %s2416_s6, 2048  ;;  %p2418_p3 = scmp.lt.s32.totalorder %s2990_s11, %s2416_s6 }
  0x97   : > { %p2413_p8 = pnand %p2411_p5, %p2367_p2  ;;  %p2419_p6 = scmp.lt.s32.totalorder %s2417_s16, %s2410_s17 }
  0x99   : > { %p2414_p1 = pneg %p2413_p8  ;;  %p2420_p13 = por %p2419_p6, %p2418_p3 }
  0x9b   : > { %p2421_p7 = pnand %p2420_p13, %p2414_p1 }
  0x9d   : > { %2424 = shalt.err (!%p2421_p7)
}
  0x9e   : > { %s3727_s5 = smov 4   ;;  %s3728_s7 = smov 64  }
  0x9f   : > { %2083 = dma.hbm_to_vmem [thread:$0]  (!%p2942_p11), %s2954_s21, 1024, %s2990_s11, %s2958_s24, %s3728_s7, %s3728_s7, %s3727_s5  }
  0xa0   : > { %s3729_s25 = sand.u32 1, %s2687_s8   ;;  %s2425_s9 = scalar_lea.hbm %s3050_s30, 1024 }
  0xa1   : > { %s3089_s18 = scalar_lea.sflag [#allocation4], %s3729_s25  ;;  %p2426_p1 = scmp.ne.s32.totalorder %s3050_s30, %s2425_s9 }
  0xa2   : > { %p2427_p2 = pneg %p3056_p12  ;;  %s2430_s28 = scalar_lea.hbm %s3724_s0, 16384 }
  0xa3   : > { %p2431_p4 = scmp.lt.u32.totalorder %s3050_s30, %s3724_s0  ;;  %p2432_p11 = scmp.lt.u32.totalorder %s2430_s28, %s2425_s9 }
  0xa4   : > { %p2428_p3 = pnand %p2427_p2, %p2426_p1  ;;  %p2434_p10 = scmp.lt.u32.totalorder %s2425_s9, %s3050_s30 }
  0xa5   : > { %p2433_p9 = por %p2432_p11, %p2431_p4 }
  0xa6   : > { %p2429_p0 = pneg %p2428_p3 }
  0xa7   : > { %p2435_p5 = por %p2434_p10, %p2433_p9 }
  0xa9   : > { %p2436_p8 = pnand %p2435_p5, %p2429_p0 }
  0xab   : > { %2439 = shalt.err (!%p2436_p8)
}
  0xac   : > { %s2440_s21 = scalar_lea.vmem %s3045_s14, 1024  ;;  %s2722_s24 = smov [#allocation3]  }
  0xad   : > { %p2441_p6 = scmp.ne.s32.totalorder %s3045_s14, %s2440_s21  ;;  %s2445_s11 = sshll.u32 %s2722_s24, 4  ;;  %s2446_s11 = int_to_ptr.vmem [resolvable:$false] %s2445_s11 }
  0xae   : > { %s2447_s1 = scalar_lea.vmem %s2446_s11, 2048  ;;  %p2448_p1 = scmp.lt.s32.totalorder %s3045_s14, %s2446_s11 }
  0xaf   : > { %p2443_p13 = pnand %p2441_p6, %p2427_p2  ;;  %p2449_p3 = scmp.lt.s32.totalorder %s2447_s1, %s2440_s21 }
  0xb1   : > { %p2444_p7 = pneg %p2443_p13  ;;  %p2450_p4 = por %p2449_p3, %p2448_p1 }
  0xb3   : > { %p2451_p11 = pnand %p2450_p4, %p2444_p7 }
  0xb5   : > { %2454 = shalt.err (!%p2451_p11)
}
  0xb6   : > { %s3730_s6 = sld [smem:[#allocation23_spill]]  ;;  %s1793_s16 = sshll.u32 %s2703_s12, 8 }
  0xb7   : > { %2077 = dma.hbm_to_vmem [thread:$0]  (!%p3056_p12), %s3050_s30, 1024, %s3045_s14, %s3089_s18, %s3728_s7, %s3728_s7, %s3727_s5  }
  0xb8   : > { %s144_s25 = sadd.s32 1, %s2663_s26  ;;  %p3731_p0 = scmp.eq.s32.totalorder %s3003_s10, 0 }
  0xb9   : > { %p3732_p9 = scmp.eq.s32.totalorder %s2715_s15, 0  ;;  %s342_s9 = sand.u32 1, %s2663_s26  }
  0xba   : > { %s3127_s19 = scalar_select %p3731_p0, %s2663_s26, %s144_s25  }
  0xbb   : > { %s1695_s22 = sshll.u32 %s342_s9, 4  ;;  %s3733_s27 = sld [smem:[#allocation43_spill]] }
  0xbc   : > { %p151_p2 = scmp.ne.s32.totalorder %s2663_s26, %s3730_s6  ;;  %p3735_p5 = scmp.lt.s32.totalorder %s2715_s15, 16 }
  0xbd   : > { %s344_s10 = scalar_lea.vmem [#allocation9], %s1695_s22  ;;  %s3737_s18 = sand.u32 1, %s2715_s15  }
  0xbe   : > { %p153_p10 = por %p151_p2, %p3732_p9  ;;  %s351_s30 = sshll.u32 %s344_s10, 4  ;;  %s3143_s30 = int_to_ptr.vmem [resolvable:$true] %s351_s30 }
  0xbf   : > { %s3147_s24 = scalar_lea.sflag [#allocation10], %s3737_s18 }
  0xc0   : > { %p3139_p12 = pnand %p3735_p5, %p153_p10 }
  0xc1   : > { %s3734_s17 = smov %s3733_s27  ;;  %s3135_s21 = scalar_lea.hbm %s3733_s27, %s1793_s16 }
  0xc2   : > { %s2455_s11 = scalar_lea.hbm %s3135_s21, 256  ;;  %p2457_p6 = pneg %p3139_p12 }
  0xc3   : > { %p2456_p8 = scmp.ne.s32.totalorder %s3135_s21, %s2455_s11  ;;  %s2460_s16 = scalar_lea.hbm %s3734_s17, 1024 }
  0xc4   : > { %p2461_p1 = scmp.lt.u32.totalorder %s3135_s21, %s3734_s17  ;;  %p2462_p3 = scmp.lt.u32.totalorder %s2460_s16, %s2455_s11 }
  0xc5   : > { %p2458_p13 = pnand %p2457_p6, %p2456_p8  ;;  %p2464_p11 = scmp.lt.u32.totalorder %s2455_s11, %s3135_s21 }
  0xc6   : > { %p2463_p4 = por %p2462_p3, %p2461_p1 }
  0xc7   : > { %p2459_p7 = pneg %p2458_p13 }
  0xc8   : > { %p2465_p2 = por %p2464_p11, %p2463_p4 }
  0xca   : > { %p2466_p0 = pnand %p2465_p2, %p2459_p7 }
  0xcc   : > { %2469 = shalt.err (!%p2466_p0)
}
  0xcd   : > { %s2470_s22 = scalar_lea.vmem %s3143_s30, 256  ;;  %s2723_s4 = smov [#allocation9]  }
  0xce   : > { %p2471_p9 = scmp.ne.s32.totalorder %s3143_s30, %s2470_s22  ;;  %s2475_s28 = sshll.u32 %s2723_s4, 4  ;;  %s2476_s28 = int_to_ptr.vmem [resolvable:$false] %s2475_s28 }
  0xcf   : > { %s2477_s27 = scalar_lea.vmem %s2476_s28, 512  ;;  %p2478_p8 = scmp.lt.s32.totalorder %s3143_s30, %s2476_s28 }
  0xd0   : > { %p2473_p10 = pnand %p2471_p9, %p2457_p6  ;;  %p2479_p13 = scmp.lt.s32.totalorder %s2477_s27, %s2470_s22 }
  0xd2   : > { %p2474_p5 = pneg %p2473_p10  ;;  %p2480_p1 = por %p2479_p13, %p2478_p8 }
  0xd4   : > { %p2481_p3 = pnand %p2480_p1, %p2474_p5 }
  0xd6   : > { %2484 = shalt.err (!%p2481_p3)
}
  0xd7   : > { %2086 = dma.hbm_to_vmem [thread:$0]  (!%p3139_p12), %s3135_s21, 256, %s3143_s30, %s3147_s24, %s3728_s7, %s3728_s7, %s3727_s5  }
  0xd8   : > { %s3738_s10 = sld [smem:[#allocation37_spill]] }
  0xde   : > { %p3739_p6 = scmp.ne.s32.totalorder %s3738_s10, 0 }
  0xdf   : > { %s3740_s18 = sld [smem:[#allocation25_spill]] (!%p3739_p6)  ;;  %s3741_s11 = sld [smem:[#allocation32_spill]] (!%p3739_p6) }
  0xe0   : > { %363 = sbr.rel (%p3739_p6) target bundleno = 1450 (0x5aa), region = 40 }
  0xe5   : > { %s365_s1 = sand.u32 (!%p3739_p6), 1, %s3740_s18   ;;  %p3742_p7 = scmp.ne.s32.totalorder (!%p3739_p6), %s3741_s11, 0 }
  0xe6   : > { %s1699_s6 = sshll.u32 (!%p3739_p6), %s365_s1, 6  ;;  %s366_s16 = scalar_lea.sflag (!%p3739_p6), [#allocation4], %s365_s1 }
  0xe7   : > { %s3181_s25 = scalar_lea.vmem [#allocation3], %s1699_s6 }
  0xe8   : > { %2618 = dma.done.wait (%p3742_p7), %s366_s16, 1024  }
  0xe9   : > { %2620 = vsyncadd (%p3742_p7), %s366_s16, 4294966272  ;;  %s3743_s14 = sld [smem:[#allocation31_spill]]  ;;  %s3744_s9 = sld [smem:[#allocation24_spill]] }
  0xea   : > { %s3745_s22 = sld [smem:[#allocation33_spill]] }
  0xef   : > { %s374_s4 = sand.u32 1, %s3743_s14   ;;  %s376_s5 = sand.u32 1, %s3744_s9  }
  0xf0   : > { %s1700_s7 = sshll.u32 %s376_s5, 6  ;;  %s375_s21 = scalar_lea.sflag [#allocation7], %s374_s4 }
  0xf1   : > { %s3189_s30 = scalar_lea.vmem [#allocation6], %s1700_s7  ;;  %p3746_p12 = scmp.ne.s32.totalorder %s3745_s22, 0 }
  0xf3   : > { %2622 = dma.done.wait (%p3746_p12), %s375_s21, 2048  }
  0xf4   : > { %2624 = vsyncadd (%p3746_p12), %s375_s21, 4294965248  ;;  %s3747_s24 = sld [smem:[#allocation23_spill]]  ;;  %s3748_s28 = sld [smem:[#allocation34_spill]] }
  0xf5   : > { %s387_s18 = scalar_lea.vmem [#allocation8], %s1700_s7  ;;  %s393_s11 = scalar_lea.sflag [#allocation10], %s374_s4 }
  0xfa   : > { %s394_s27 = sand.u32 1, %s3747_s24   ;;  %p3749_p4 = scmp.ne.s32.totalorder %s3748_s28, 0 }
  0xfb   : > { %s3196_s10 = sshll.u32 %s394_s27, 4 }
  0xfc   : > { %s396_s1 = scalar_lea.vmem [#allocation9], %s3196_s10 }
  0xfd   : > { %2626 = dma.done.wait (%p3749_p4), %s393_s11, 256  }
  0xfe   : > { %2628 = vsyncadd (%p3749_p4), %s393_s11, 4294967040  ;;  %p3750_p11 = scmp.eq.s32.totalorder %s3743_s14, 0 }
 0x100   : > { %2630 = dma.done.wait (%p3750_p11), [#allocation10], 16   ;;  %p3751_p2 = pmov %p3750_p11 }
 0x101   : > { %s3752_s6 = sld [smem:[#allocation22_spill]]  ;;  %vm581_vm0 = vcmask 261120   ;;  %v3211_v0 = vld [vmem:[%s387_s18] sm:$0xf]  ;;  %v3213_v1 = vld [vmem:[%s387_s18 + $0x4] sm:$0xf] }
 0x102   : > { %2632 = vsyncadd (%p3751_p2), [#allocation10], 4294967280  ;;  %v3215_v2 = vld [vmem:[%s387_s18 + $0x8] sm:$0xf]  ;;  %v3217_v3 = vld [vmem:[%s387_s18 + $0xc] sm:$0xf] }
 0x103   : > { %v3219_v4 = vld [vmem:[%s387_s18 + $0x10] sm:$0xf]  ;;  %v3221_v5 = vld [vmem:[%s387_s18 + $0x14] sm:$0xf]  ;;  %v3223_v6 = vld [vmem:[%s387_s18 + $0x18] sm:$0xf] }
 0x104   : > { %v3225_v7 = vld [vmem:[%s387_s18 + $0x1c] sm:$0xf]  ;;  %v3227_v8 = vld [vmem:[%s387_s18 + $0x20] sm:$0xf]  ;;  %v3229_v9 = vld [vmem:[%s387_s18 + $0x24] sm:$0xf] }
 0x105   : > { %v3231_v10 = vld [vmem:[%s387_s18 + $0x28] sm:$0xf]  ;;  %v3233_v11 = vld [vmem:[%s387_s18 + $0x2c] sm:$0xf]  ;;  %v3235_v12 = vld [vmem:[%s387_s18 + $0x30] sm:$0xf] }
 0x106   : > { %v3237_v13 = vld [vmem:[%s387_s18 + $0x34] sm:$0xf]  ;;  %v3239_v14 = vld [vmem:[%s387_s18 + $0x38] sm:$0xf]  ;;  %v3241_v15 = vld [vmem:[%s387_s18 + $0x3c] sm:$0xf] }
 0x107   : > { %s3208_s16 = sand.u32 1, %s3752_s6   ;;  %v2255_v16 = vld [vmem:[%s3189_s30] sm:$0xff]   ;;  %v2256_v17 = vld [vmem:[%s3189_s30 + $0x8] sm:$0xff]   ;;  %v2257_v19 = vld [vmem:[%s3189_s30 + $0x10] sm:$0xff]   ;;  %s3753_s22 = sld [smem:[#allocation26_spill]] }
 0x108   : > { %s1704_s9 = sshll.u32 %s3208_s16, 6  ;;  %2046 = vmatprep.subr.msk.bf16.mxu0 %vm581_vm0, %v2255_v16  ;;  %v607_v18 = vsel %vm581_vm0, %v2255_v16, 0  ;;  %v610_v20 = vsel %vm581_vm0, %v2256_v17, 0  ;;  %v2263_v21 = vld [vmem:[%s3181_s25] sm:$0xff]   ;;  %v613_v22 = vsel %vm581_vm0, %v2257_v19, 0  ;;  %v2258_v23 = vld [vmem:[%s3189_s30 + $0x18] sm:$0xff]  }
 0x109   : > { %1963 = vmatpush3.bf16.xpose.msra.mxu0 %v607_v18  ;;  %1978 = vmatprep.mubr.msk.bf16.mxu0 %vm581_vm0, %v2263_v21  ;;  %v616_v24 = vsel %vm581_vm0, %v2258_v23, 0  ;;  %v2259_v25 = vld [vmem:[%s3189_s30 + $0x20] sm:$0xff]   ;;  %v2260_v27 = vld [vmem:[%s3189_s30 + $0x28] sm:$0xff]   ;;  %v2261_v29 = vld [vmem:[%s3189_s30 + $0x30] sm:$0xff]   ;;  %s3409_s14 = scalar_lea.vmem [#allocation13], %s1704_s9 }
 0x10a   : > { %2047 = vmatprep.subr.msk.bf16.mxu0 %vm581_vm0, %v2256_v17  ;;  %v619_v26 = vsel %vm581_vm0, %v2259_v25, 0  ;;  %v622_v28 = vsel %vm581_vm0, %v2260_v27, 0  ;;  %v625_v30 = vsel %vm581_vm0, %v2261_v29, 0  ;;  %v2262_v31 = vld [vmem:[%s3189_s30 + $0x38] sm:$0xff]   ;;  %v2264_v33 = vld [vmem:[%s3181_s25 + $0x8] sm:$0xff]   ;;  %v2265_v34 = vld [vmem:[%s3181_s25 + $0x10] sm:$0xff]  }
 0x10b   : > { %v628_v32 = vsel %vm581_vm0, %v2262_v31, 0  ;;  %v2266_v35 = vld [vmem:[%s3181_s25 + $0x18] sm:$0xff]   ;;  %v2267_v36 = vld [vmem:[%s3181_s25 + $0x20] sm:$0xff]   ;;  %v2268_v37 = vld [vmem:[%s3181_s25 + $0x28] sm:$0xff]  }
 0x10c   : > { %v2269_v38 = vld [vmem:[%s3181_s25 + $0x30] sm:$0xff]   ;;  %v2270_v39 = vld [vmem:[%s3181_s25 + $0x38] sm:$0xff]   ;;  %s3405_s25 = scalar_lea.vmem [#allocation12], %s1704_s9 }
 0x10d   : > { %p1730_p0 = scmp.ne.s32.totalorder %s3753_s22, 0 }
 0x111   : > { %1965 = vmatpush3.bf16.xpose.msra.mxu0 %v610_v20 }
 0x112   : > { %2048 = vmatprep.subr.msk.bf16.mxu0 %vm581_vm0, %v2257_v19 }
 0x119   : > { %1967 = vmatpush3.bf16.xpose.msra.mxu0 %v613_v22 }
 0x11a   : > { %2049 = vmatprep.subr.msk.bf16.mxu0 %vm581_vm0, %v2258_v23 }
 0x121   : > { %1969 = vmatpush3.bf16.xpose.msra.mxu0 %v616_v24 }
 0x122   : > { %2050 = vmatprep.subr.msk.bf16.mxu0 %vm581_vm0, %v2259_v25 }
 0x129   : > { %1971 = vmatpush3.bf16.xpose.msra.mxu0 %v619_v26 }
 0x12a   : > { %2051 = vmatprep.subr.msk.bf16.mxu0 %vm581_vm0, %v2260_v27 }
 0x131   : > { %1973 = vmatpush3.bf16.xpose.msra.mxu0 %v622_v28 }
 0x132   : > { %2052 = vmatprep.subr.msk.bf16.mxu0 %vm581_vm0, %v2261_v29 }
 0x139   : > { %1975 = vmatpush3.bf16.xpose.msra.mxu0 %v625_v30 }
 0x13a   : > { %2053 = vmatprep.subr.msk.bf16.mxu0 %vm581_vm0, %v2262_v31 }
 0x141   : > { %1977 = vmatpush3.bf16.xpose.msra.mxu0 %v628_v32 }
 0x148   : > { %1979 = vmatmul.mubr.msk.bf16.vlgmr.msra.gmra.mrb[0].mxu0 %vm581_vm0, %v2264_v33 }
 0x149   : > { %1982 = vmatprep.mubr.msk.bf16.mxu0 %vm581_vm0, %v2265_v34 }
 0x150   : > { %1983 = vmatmul.mubr.msk.bf16.gmra.mrb[4].mxu0 %vm581_vm0, %v2266_v35 }
 0x151   : > { %1986 = vmatprep.mubr.msk.bf16.mxu0 %vm581_vm0, %v2267_v36 }
 0x158   : > { %1987 = vmatmul.mubr.msk.bf16.gmra.mrb[8].mxu0 %vm581_vm0, %v2268_v37 }
 0x159   : > { %1990 = vmatprep.mubr.msk.bf16.mxu0 %vm581_vm0, %v2269_v38 }
 0x160   : > { %1991 = vmatmul.mubr.msk.bf16.gmra.mrb[12].mxu0 %vm581_vm0, %v2270_v39 }
 0x21b   : > { %v1980_v40 = vpop.f32.mrb[0].mxu0 }
 0x21c   : > { %731 = vmax.xlane.f32.xlu1 %v1980_v40  ;;  %v664_v41 = vpop.f32.mrb[1].mxu0 }
 0x21d   : > { %727 = vmax.xlane.f32.xlu0 %v664_v41  ;;  %v1981_v42 = vpop.f32.mrb[2].mxu0 }
 0x21e   : > { %v667_v43 = vpop.f32.mrb[3].mxu0 }
 0x220   : > { %733 = vmax.xlane.f32.xlu1 %v1981_v42 }
 0x221   : > { %729 = vmax.xlane.f32.xlu0 %v667_v43 }
 0x223   : > { %v1984_v44 = vpop.f32.mrb[4].mxu0 }
 0x224   : > { %v680_v45 = vpop.f32.mrb[5].mxu0 }
 0x225   : > { %739 = vmax.xlane.f32.xlu0 %v1984_v44  ;;  %v1985_v46 = vpop.f32.mrb[6].mxu0 }
 0x226   : > { %741 = vmax.xlane.f32.xlu1 %v1985_v46  ;;  %v683_v47 = vpop.f32.mrb[7].mxu0 }
 0x229   : > { %735 = vmax.xlane.f32.xlu0 %v680_v45 }
 0x22a   : > { %737 = vmax.xlane.f32.xlu1 %v683_v47 }
 0x22b   : > { %v1988_v48 = vpop.f32.mrb[8].mxu0 }
 0x22c   : > { %v3283_v49 = vpop.f32.mrb[9].mxu0 }
 0x22d   : > { %747 = vmax.xlane.f32.xlu0 %v1988_v48  ;;  %v1989_v50 = vpop.f32.mrb[10].mxu0 }
 0x22e   : > { %749 = vmax.xlane.f32.xlu1 %v1989_v50  ;;  %v3285_v51 = vpop.f32.mrb[11].mxu0 }
 0x231   : > { %743 = vmax.xlane.f32.xlu0 %v3283_v49 }
 0x232   : > { %745 = vmax.xlane.f32.xlu1 %v3285_v51 }
 0x233   : > { %v3289_v52 = vpop.f32.mrb[12].mxu0 }
 0x234   : > { %v3291_v53 = vpop.f32.mrb[13].mxu0 }
 0x235   : > { %751 = vmax.xlane.f32.xlu0 %v3291_v53  ;;  %v3294_v54 = vpop.f32.mrb[14].mxu0 }
 0x236   : > { %v3296_v55 = vpop.f32.mrb[15].mxu0 }
 0x237   : > { %753 = vmax.xlane.f32.xlu1 %v3296_v55 }
 0x239   : > { %755 = vmax.xlane.f32.xlu0 %v3289_v52 }
 0x23b   : > { %757 = vmax.xlane.f32.xlu1 %v3294_v54 }
 0x2a9   : > { %v732_v56 = vpop.xlane.xlu1 %731 }
 0x2aa   : > { %v761_v57 = vsub.f32 %v1980_v40, %v732_v56  ;;  %v728_v58 = vpop.xlane.xlu0 %727 }
 0x2ab   : > { %v759_v59 = vsub.f32 %v664_v41, %v728_v58 }
 0x2ac   : > { %v779_v60 = vmul.f32 1.442695, %v761_v57 }
 0x2ad   : > { %v775_v61 = vmul.f32 1.442695, %v759_v59  ;;  %v734_v62 = vpop.xlane.xlu1 %733 }
 0x2ae   : > { %2271 = vpow2.f32 %v779_v60  ;;  %v762_v63 = vsub.f32 %v1981_v42, %v734_v62  ;;  %v730_v16 = vpop.xlane.xlu0 %729 }
 0x2af   : > { %v760_v17 = vsub.f32 %v667_v43, %v730_v16  ;;  %2273 = vpow2.f32 %v775_v61 }
 0x2b0   : > { %v781_v18 = vmul.f32 1.442695, %v762_v63 }
 0x2b1   : > { %v777_v19 = vmul.f32 1.442695, %v760_v17 }
 0x2b2   : > { %2275 = vpow2.f32 %v781_v18  ;;  %v740_v20 = vpop.xlane.xlu0 %739 }
 0x2b3   : > { %v765_v21 = vsub.f32 %v1984_v44, %v740_v20  ;;  %v742_v22 = vpop.xlane.xlu1 %741  ;;  %2277 = vpow2.f32 %v777_v19 }
 0x2b4   : > { %v766_v23 = vsub.f32 %v1985_v46, %v742_v22 }
 0x2b5   : > { %v787_v24 = vmul.f32 1.442695, %v765_v21 }
 0x2b6   : > { %v789_v25 = vmul.f32 1.442695, %v766_v23  ;;  %v736_v26 = vpop.xlane.xlu0 %735 }
 0x2b7   : > { %2279 = vpow2.f32 %v787_v24  ;;  %v763_v27 = vsub.f32 %v680_v45, %v736_v26  ;;  %v738_v28 = vpop.xlane.xlu1 %737 }
 0x2b8   : > { %v3301_v29 = vpop.eup %2271  ;;  %v764_v30 = vsub.f32 %v683_v47, %v738_v28  ;;  %2281 = vpow2.f32 %v789_v25 }
 0x2b9   : > { %v783_v31 = vmul.f32 1.442695, %v763_v27  ;;  %811 = vadd.xlane.f32.xlu0 %v3301_v29  ;;  %v3304_v34 = vpop.eup %2273 }
 0x2ba   : > { %v785_v32 = vmul.f32 1.442695, %v764_v30  ;;  %v748_v33 = vpop.xlane.xlu0 %747 }
 0x2bb   : > { %2283 = vpow2.f32 %v783_v31  ;;  %v769_v35 = vsub.f32 %v1988_v48, %v748_v33  ;;  %v750_v36 = vpop.xlane.xlu1 %749 }
 0x2bc   : > { %v3306_v37 = vpop.eup %2275  ;;  %v770_v38 = vsub.f32 %v1989_v50, %v750_v36  ;;  %2285 = vpow2.f32 %v785_v32 }
 0x2bd   : > { %v795_v39 = vmul.f32 1.442695, %v769_v35  ;;  %807 = vadd.xlane.f32.xlu0 %v3304_v34  ;;  %813 = vadd.xlane.f32.xlu1 %v3306_v37  ;;  %v3311_v44 = vpop.eup %2277 }
 0x2be   : > { %v797_v40 = vmul.f32 1.442695, %v770_v38  ;;  %v744_v41 = vpop.xlane.xlu0 %743 }
 0x2bf   : > { %2287 = vpow2.f32 %v795_v39  ;;  %v767_v42 = vsub.f32 %v3283_v49, %v744_v41  ;;  %v746_v43 = vpop.xlane.xlu1 %745 }
 0x2c0   : > { %v768_v45 = vsub.f32 %v3285_v51, %v746_v43  ;;  %2289 = vpow2.f32 %v797_v40 }
 0x2c1   : > { %v3314_v46 = vpop.eup %2279  ;;  %v791_v47 = vmul.f32 1.442695, %v767_v42  ;;  %809 = vadd.xlane.f32.xlu1 %v3311_v44 }
 0x2c2   : > { %v793_v48 = vmul.f32 1.442695, %v768_v45  ;;  %819 = vadd.xlane.f32.xlu0 %v3314_v46  ;;  %v752_v50 = vpop.xlane.xlu0 %751  ;;  %v3319_v57 = vpop.eup %2281 }
 0x2c3   : > { %2291 = vpow2.f32 %v791_v47  ;;  %v771_v56 = vsub.f32 %v3291_v53, %v752_v50 }
 0x2c4   : > { %v754_v49 = vpop.xlane.xlu1 %753  ;;  %2293 = vpow2.f32 %v793_v48 }
 0x2c5   : > { %v3321_v58 = vpop.eup %2283  ;;  %v799_v59 = vmul.f32 1.442695, %v771_v56  ;;  %v772_v51 = vsub.f32 %v3296_v55, %v754_v49  ;;  %821 = vadd.xlane.f32.xlu1 %v3319_v57 }
 0x2c6   : > { %815 = vadd.xlane.f32.xlu0 %v3321_v58  ;;  %v756_v60 = vpop.xlane.xlu0 %755  ;;  %v3327_v63 = vpop.eup %2285 }
 0x2c7   : > { %2295 = vpow2.f32 %v799_v59  ;;  %v801_v61 = vmul.f32 1.442695, %v772_v51  ;;  %v773_v62 = vsub.f32 %v3289_v52, %v756_v60 }
 0x2c8   : > { %v758_v53 = vpop.xlane.xlu1 %757 }
 0x2c9   : > { %v3329_v16 = vpop.eup %2287  ;;  %2297 = vpow2.f32 %v801_v61  ;;  %v803_v17 = vmul.f32 1.442695, %v773_v62  ;;  %v774_v18 = vsub.f32 %v3294_v54, %v758_v53  ;;  %817 = vadd.xlane.f32.xlu1 %v3327_v63 }
 0x2ca   : > { %827 = vadd.xlane.f32.xlu0 %v3329_v16  ;;  %v3334_v19 = vpop.eup %2289 }
 0x2cb   : > { %2299 = vpow2.f32 %v803_v17  ;;  %v805_v55 = vmul.f32 1.442695, %v774_v18 }
 0x2cd   : > { %v3336_v20 = vpop.eup %2291  ;;  %2301 = vpow2.f32 %v805_v55  ;;  %829 = vadd.xlane.f32.xlu1 %v3334_v19 }
 0x2ce   : > { %823 = vadd.xlane.f32.xlu0 %v3336_v20  ;;  %v3340_v52 = vpop.eup %2293 }
 0x2d1   : > { %v3342_v21 = vpop.eup %2295  ;;  %825 = vadd.xlane.f32.xlu1 %v3340_v52 }
 0x2d2   : > { %831 = vadd.xlane.f32.xlu0 %v3342_v21 }
 0x2d3   : > { %v3346_v54 = vpop.eup %2297 }
 0x2d5   : > { %v3348_v22 = vpop.eup %2299  ;;  %833 = vadd.xlane.f32.xlu1 %v3346_v54 }
 0x2d6   : > { %835 = vadd.xlane.f32.xlu0 %v3348_v22 }
 0x2d7   : > { %v3352_v23 = vpop.eup %2301 }
 0x2d9   : > { %837 = vadd.xlane.f32.xlu1 %v3352_v23 }
 0x346   : > { %v812_v24 = vpop.xlane.xlu0 %811 }
 0x347   : > { %2303 = vrcp.f32 %v812_v24 }
 0x34a   : > { %v808_v25 = vpop.xlane.xlu0 %807  ;;  %v814_v26 = vpop.xlane.xlu1 %813 }
 0x34b   : > { %2305 = vrcp.f32 %v808_v25 }
 0x34c   : > { %2307 = vrcp.f32 %v814_v26 }
 0x34e   : > { %v810_v27 = vpop.xlane.xlu1 %809 }
 0x34f   : > { %2309 = vrcp.f32 %v810_v27  ;;  %v820_v28 = vpop.xlane.xlu0 %819 }
 0x350   : > { %2311 = vrcp.f32 %v820_v28 }
 0x351   : > { %v2304_v30 = vpop.eup %2303 }
 0x352   : > { %v3356_v31 = vmul.f32 %v2304_v30, %v3301_v29  ;;  %v822_v32 = vpop.xlane.xlu1 %821 }
 0x353   : > { %2313 = vrcp.f32 %v822_v32  ;;  %v816_v33 = vpop.xlane.xlu0 %815 }
 0x354   : > { %2315 = vrcp.f32 %v816_v33 }
 0x355   : > { %v2306_v35 = vpop.eup %2305 }
 0x356   : > { %v2308_v36 = vpop.eup %2307  ;;  %v3359_v38 = vmul.f32 %v2306_v35, %v3304_v34  ;;  %v818_v39 = vpop.xlane.xlu1 %817 }
 0x357   : > { %v3362_v40 = vmul.f32 %v2308_v36, %v3306_v37  ;;  %2317 = vrcp.f32 %v818_v39  ;;  %v828_v41 = vpop.xlane.xlu0 %827 }
 0x358   : > { %2319 = vrcp.f32 %v828_v41 }
 0x359   : > { %v2310_v42 = vpop.eup %2309 }
 0x35a   : > { %v2312_v43 = vpop.eup %2311  ;;  %v3365_v29 = vmul.f32 %v2310_v42, %v3311_v44  ;;  %v830_v45 = vpop.xlane.xlu1 %829 }
 0x35b   : > { %v3368_v47 = vmul.f32 %v2312_v43, %v3314_v46  ;;  %2321 = vrcp.f32 %v830_v45  ;;  %v824_v48 = vpop.xlane.xlu0 %823 }
 0x35c   : > { %2323 = vrcp.f32 %v824_v48 }
 0x35d   : > { %v2314_v34 = vpop.eup %2313 }
 0x35e   : > { %v2316_v50 = vpop.eup %2315  ;;  %v3371_v37 = vmul.f32 %v2314_v34, %v3319_v57  ;;  %v826_v56 = vpop.xlane.xlu1 %825 }
 0x35f   : > { %v3374_v49 = vmul.f32 %v2316_v50, %v3321_v58  ;;  %2325 = vrcp.f32 %v826_v56  ;;  %v832_v59 = vpop.xlane.xlu0 %831 }
 0x360   : > { %2327 = vrcp.f32 %v832_v59 }
 0x361   : > { %v2318_v44 = vpop.eup %2317 }
 0x362   : > { %v2320_v51 = vpop.eup %2319  ;;  %v3377_v46 = vmul.f32 %v2318_v44, %v3327_v63  ;;  %v834_v60 = vpop.xlane.xlu1 %833 }
 0x363   : > { %v3380_v61 = vmul.f32 %v2320_v51, %v3329_v16  ;;  %2329 = vrcp.f32 %v834_v60  ;;  %v836_v62 = vpop.xlane.xlu0 %835 }
 0x364   : > { %2331 = vrcp.f32 %v836_v62 }
 0x365   : > { %v2322_v57 = vpop.eup %2321 }
 0x366   : > { %v2324_v53 = vpop.eup %2323  ;;  %v3383_v58 = vmul.f32 %v2322_v57, %v3334_v19  ;;  %v838_v17 = vpop.xlane.xlu1 %837 }
 0x367   : > { %v3386_v18 = vmul.f32 %v2324_v53, %v3336_v20  ;;  %2333 = vrcp.f32 %v838_v17 }
 0x368   : > { %v1854_v32 = vpack.c.bf16 (!%p1730_p0), %v3383_v58, %v3380_v61 }
 0x369   : > { %v2326_v63 = vpop.eup %2325 }
 0x36a   : > { %v2328_v55 = vpop.eup %2327  ;;  %v3389_v16 = vmul.f32 %v2326_v63, %v3340_v52  ;;  %v1829_v52 = vpack.c.bf16 (!%p1730_p0), %v3365_v29, %v3359_v38  ;;  %1910 = vst [vmem:[%s3409_s14 + $0x28] sm:$0xff] (!%p1730_p0), %v1854_v32  }
 0x36b   : > { %v3392_v24 = vmul.f32 %v2328_v55, %v3342_v21  ;;  %v1834_v21 = vpack.c.bf16 (!%p1730_p0), %v3362_v40, %v3356_v31 }
 0x36c   : > { %874 = sbr.rel (%p1730_p0) target bundleno = 892 (0x37c), region = 64  ;;  %v1849_v30 = vpack.c.bf16 (!%p1730_p0), %v3389_v16, %v3386_v18  ;;  %1830 = vst [vmem:[%s3409_s14] sm:$0xff] (!%p1730_p0), %v1829_v52  }
 0x36d   : > { %v2330_v25 = vpop.eup %2329  ;;  %1906 = vst [vmem:[%s3409_s14 + $0x8] sm:$0xff] (!%p1730_p0), %v1834_v21  }
 0x36e   : > { %v2332_v26 = vpop.eup %2331  ;;  %v3395_v27 = vmul.f32 %v2330_v25, %v3346_v54  ;;  %v1839_v54 = vpack.c.bf16 (!%p1730_p0), %v3377_v46, %v3374_v49  ;;  %1909 = vst [vmem:[%s3409_s14 + $0x20] sm:$0xff] (!%p1730_p0), %v1849_v30  }
 0x36f   : > { %v3398_v19 = vmul.f32 %v2332_v26, %v3348_v22  ;;  %v1844_v22 = vpack.c.bf16 (!%p1730_p0), %v3371_v37, %v3368_v47 }
 0x370   : > { %v1859_v33 = vpack.c.bf16 (!%p1730_p0), %v3395_v27, %v3392_v24  ;;  %1907 = vst [vmem:[%s3409_s14 + $0x10] sm:$0xff] (!%p1730_p0), %v1839_v54  }
 0x371   : > { %v2334_v28 = vpop.eup %2333  ;;  %1908 = vst [vmem:[%s3409_s14 + $0x18] sm:$0xff] (!%p1730_p0), %v1844_v22  }
 0x372   : > { %v3401_v20 = vmul.f32 %v2334_v28, %v3352_v23  ;;  %v1747_v23 = vld [vmem:[#allocation11] ss:$0 sm:$0xff] (!%p1730_p0)  ;;  %1911 = vst [vmem:[%s3409_s14 + $0x30] sm:$0xff] (!%p1730_p0), %v1859_v33  }
 0x373   : > { %962 = vst [vmem:[#allocation2] sm:$0xff] %v1747_v23  ;;  %963 = vst [vmem:[#allocation2 + $0x8] sm:$0xff] %v1747_v23 }
 0x374   : > { %v1864_v35 = vpack.c.bf16 %v3401_v20, %v3398_v19  ;;  %964 = vst [vmem:[#allocation2 + $0x10] sm:$0xff] %v1747_v23  ;;  %965 = vst [vmem:[#allocation2 + $0x18] sm:$0xff] %v1747_v23 }
 0x375   : > { %966 = vst [vmem:[#allocation2 + $0x20] sm:$0xff] %v1747_v23  ;;  %967 = vst [vmem:[#allocation2 + $0x28] sm:$0xff] %v1747_v23 }
 0x376   : > { %968 = vst [vmem:[#allocation2 + $0x30] sm:$0xff] %v1747_v23  ;;  %969 = vst [vmem:[#allocation2 + $0x38] sm:$0xff] %v1747_v23 }
 0x377   : > { %970 = vst [vmem:[#allocation2 + $0x40] sm:$0xff] %v1747_v23  ;;  %971 = vst [vmem:[#allocation2 + $0x48] sm:$0xff] %v1747_v23 }
 0x378   : > { %972 = vst [vmem:[#allocation2 + $0x50] sm:$0xff] %v1747_v23  ;;  %973 = vst [vmem:[#allocation2 + $0x58] sm:$0xff] %v1747_v23 }
 0x379   : > { %974 = vst [vmem:[#allocation2 + $0x60] sm:$0xff] %v1747_v23  ;;  %975 = vst [vmem:[#allocation2 + $0x68] sm:$0xff] %v1747_v23 }
 0x37a   : > { %976 = vst [vmem:[#allocation2 + $0x70] sm:$0xff] %v1747_v23  ;;  %977 = vst [vmem:[#allocation2 + $0x78] sm:$0xff] %v1747_v23 }
 0x37b   : > { %1912 = vst [vmem:[%s3409_s14 + $0x38] sm:$0xff] %v1864_v35  }
 0x37c PF: > { %v1748_v36 = vcombine.low %v3211_v0, %v3213_v1  ;;  %v1749_v39 = vcombine.low %v3215_v2, %v3217_v3  ;;  %v978_v41 = vpack.c.bf16 %v3365_v29, %v3359_v38  ;;  %v1750_v42 = vcombine.low %v3219_v4, %v3221_v5  ;;  %v2335_v4 = vld [vmem:[%s396_s1] sm:$0xff]   ;;  %v1134_v63 = vld [vmem:[#allocation2 + $0x18] sm:$0xff]  ;;  %v1136_v30 = vld [vmem:[#allocation2 + $0x28] sm:$0xff]  ;;  %s3754_s4 = sld [smem:[#allocation26_spill]] }
 0x37d   : > { %v1751_v43 = vcombine.low %v3223_v6, %v3225_v7  ;;  %v1752_v0 = vcombine.low %v3227_v8, %v3229_v9  ;;  %v1753_v1 = vcombine.low %v3231_v10, %v3233_v11  ;;  %v1754_v2 = vcombine.low %v3235_v12, %v3237_v13  ;;  %v2336_v7 = vld [vmem:[%s396_s1 + $0x8] sm:$0xff]   ;;  %v1135_v52 = vld [vmem:[#allocation2 + $0x20] sm:$0xff] }
 0x37e   : > { %1994 = vmatprep.subr.bf16.mxu1 %v1748_v36  ;;  %2010 = vmatprep.mubr.bf16.mxu1 %v978_v41  ;;  %v1755_v3 = vcombine.low %v3239_v14, %v3241_v15  ;;  %v979_v5 = vpack.c.bf16 %v3362_v40, %v3356_v31  ;;  %v980_v6 = vpack.c.bf16 %v3377_v46, %v3374_v49  ;;  %v1138_v54 = vld [vmem:[#allocation2 + $0x38] sm:$0xff] }
 0x37f   : > { %1995 = vmatpush3.bf16.msra.mxu1 %v1748_v36  ;;  %v981_v8 = vpack.c.bf16 %v3371_v37, %v3368_v47  ;;  %v982_v9 = vpack.c.bf16 %v3389_v16, %v3386_v18  ;;  %v983_v10 = vpack.c.bf16 %v3383_v58, %v3380_v61  ;;  %v984_v11 = vpack.c.bf16 %v3395_v27, %v3392_v24  ;;  %v1133_v58 = vld [vmem:[#allocation2 + $0x10] sm:$0xff] }
 0x380   : > { %1996 = vmatprep.subr.bf16.mxu1 %v1749_v39  ;;  %v985_v12 = vpack.c.bf16 %v3401_v20, %v3398_v19  ;;  %v1137_v20 = vld [vmem:[#allocation2 + $0x30] sm:$0xff] }
 0x381   : > { %v1141_v41 = vld [vmem:[#allocation2 + $0x50] sm:$0xff] }
 0x382   : > { %p1766_p9 = scmp.ne.s32.totalorder %s3754_s4, 3 }
 0x383   : > { %1997 = vmatpush3.bf16.msra.mxu1 %v1749_v39  ;;  %v1131_v17 = vld [vmem:[#allocation2] sm:$0xff]  ;;  %v1132_v24 = vld [vmem:[#allocation2 + $0x8] sm:$0xff] }
 0x384   : > { %1998 = vmatprep.subr.bf16.mxu1 %v1750_v42 }
 0x387   : > { %1999 = vmatpush3.bf16.msra.mxu1 %v1750_v42  ;;  %v1139_v42 = vld [vmem:[#allocation2 + $0x40] sm:$0xff] }
 0x388   : > { %2000 = vmatprep.subr.bf16.mxu1 %v1751_v43 }
 0x38b   : > { %2001 = vmatpush3.bf16.msra.mxu1 %v1751_v43 }
 0x38c   : > { %2002 = vmatprep.subr.bf16.mxu1 %v1752_v0 }
 0x38f   : > { %2003 = vmatpush3.bf16.msra.mxu1 %v1752_v0  ;;  %v1142_v0 = vld [vmem:[#allocation2 + $0x58] sm:$0xff] }
 0x390   : > { %2004 = vmatprep.subr.bf16.mxu1 %v1753_v1 }
 0x393   : > { %2005 = vmatpush3.bf16.msra.mxu1 %v1753_v1 }
 0x394   : > { %2006 = vmatprep.subr.bf16.mxu1 %v1754_v2 }
 0x397   : > { %2007 = vmatpush3.bf16.msra.mxu1 %v1754_v2 }
 0x398   : > { %2008 = vmatprep.subr.bf16.mxu1 %v1755_v3 }
 0x39b   : > { %2009 = vmatpush3.bf16.msra.mxu1 %v1755_v3  ;;  %v1140_v3 = vld [vmem:[#allocation2 + $0x48] sm:$0xff] }
 0x39c   : > { %2026 = vmatprep.subr.bf16.mxu1 %v2335_v4 }
 0x39e   : > { %2011 = vmatmul.mubr.bf16.vlgmr.msra.gmra.mrb[0].mxu1 %v979_v5 }
 0x39f   : > { %2014 = vmatprep.mubr.bf16.mxu1 %v980_v6  ;;  %2027 = vmatpush3.bf16.msra.mxu1 %v2335_v4 }
 0x3a0   : > { %2028 = vmatprep.subr.bf16.mxu1 %v2336_v7 }
 0x3a3   : > { %2029 = vmatpush3.bf16.msra.mxu1 %v2336_v7 }
 0x3a6   : > { %2015 = vmatmul.mubr.bf16.gmra.mrb[4].mxu1 %v981_v8 }
 0x3a7   : > { %2018 = vmatprep.mubr.bf16.mxu1 %v982_v9  ;;  %v1145_v9 = vld [vmem:[#allocation2 + $0x70] sm:$0xff] }
 0x3ae   : > { %2019 = vmatmul.mubr.bf16.gmra.mrb[8].mxu1 %v983_v10  ;;  %v1143_v10 = vld [vmem:[#allocation2 + $0x60] sm:$0xff] }
 0x3af   : > { %2022 = vmatprep.mubr.bf16.mxu1 %v984_v11 }
 0x3b6   : > { %2023 = vmatmul.mubr.bf16.gmra.mrb[12].mxu1 %v985_v12  ;;  %v1146_v12 = vld [vmem:[#allocation2 + $0x78] sm:$0xff] }
 0x471   : > { %v2012_v13 = vpop.f32.mrb[0].mxu1 }
 0x472   : > { %v1068_v14 = vpop.f32.mrb[1].mxu1 }
 0x473   : > { %v2013_v15 = vpop.f32.mrb[2].mxu1 }
 0x474   : > { %v1148_v31 = vpack.c.bf16 %v2013_v15, %v2012_v13  ;;  %v1071_v38 = vpop.f32.mrb[3].mxu1  ;;  %v1144_v15 = vld [vmem:[#allocation2 + $0x68] sm:$0xff] }
 0x475   : > { %v1147_v40 = vpack.c.bf16 %v1071_v38, %v1068_v14 }
 0x477   : > { %2030 = vmatprep.mubr.msk.bf16.mxu1 %vm581_vm0, %v1147_v40 }
 0x478   : > { %2031 = vmatmul.mubr.msk.bf16.vlgmr.msra.gmra.mrb[16].mxu1 %vm581_vm0, %v1148_v31 }
 0x479   : > { %v2016_v29 = vpop.f32.mrb[4].mxu1 }
 0x47a   : > { %v1084_v45 = vpop.f32.mrb[5].mxu1 }
 0x47b   : > { %v2017_v47 = vpop.f32.mrb[6].mxu1 }
 0x47c   : > { %v1150_v48 = vpack.c.bf16 %v2017_v47, %v2016_v29  ;;  %v1087_v34 = vpop.f32.mrb[7].mxu1 }
 0x47d   : > { %v1149_v50 = vpack.c.bf16 %v1087_v34, %v1084_v45 }
 0x47f   : > { %2034 = vmatprep.mubr.msk.bf16.mxu1 %vm581_vm0, %v1149_v50 }
 0x480   : > { %2035 = vmatmul.mubr.msk.bf16.gmra.mrb[20].mxu1 %vm581_vm0, %v1150_v48 }
 0x481   : > { %v2020_v37 = vpop.f32.mrb[8].mxu1 }
 0x482   : > { %v1100_v56 = vpop.f32.mrb[9].mxu1 }
 0x483   : > { %v2021_v49 = vpop.f32.mrb[10].mxu1 }
 0x484   : > { %v1152_v59 = vpack.c.bf16 %v2021_v49, %v2020_v37  ;;  %v1103_v44 = vpop.f32.mrb[11].mxu1 }
 0x485   : > { %v1151_v51 = vpack.c.bf16 %v1103_v44, %v1100_v56 }
 0x487   : > { %2038 = vmatprep.mubr.msk.bf16.mxu1 %vm581_vm0, %v1151_v51 }
 0x488   : > { %2039 = vmatmul.mubr.msk.bf16.gmra.mrb[24].mxu1 %vm581_vm0, %v1152_v59 }
 0x489   : > { %v2024_v46 = vpop.f32.mrb[12].mxu1 }
 0x48a   : > { %v1116_v60 = vpop.f32.mrb[13].mxu1 }
 0x48b   : > { %v2025_v61 = vpop.f32.mrb[14].mxu1 }
 0x48c   : > { %v1154_v62 = vpack.c.bf16 %v2025_v61, %v2024_v46  ;;  %v1119_v57 = vpop.f32.mrb[15].mxu1 }
 0x48d   : > { %v1153_v53 = vpack.c.bf16 %v1119_v57, %v1116_v60 }
 0x48f   : > { %2042 = vmatprep.mubr.msk.bf16.mxu1 %vm581_vm0, %v1153_v53 }
 0x490   : > { %2043 = vmatmul.mubr.msk.bf16.gmra.mrb[28].mxu1 %vm581_vm0, %v1154_v62 }
 0x54b   : > { %v2032_v18 = vpop.f32.mrb[16].mxu1 }
 0x54c   : > { %v1294_v55 = vadd.f32 %v2032_v18, %v1133_v58  ;;  %v1229_v16 = vpop.f32.mrb[17].mxu1 }
 0x54d   : > { %v1292_v25 = vadd.f32 %v1229_v16, %v1131_v17  ;;  %v2033_v26 = vpop.f32.mrb[18].mxu1 }
 0x54e   : > { %1310 = vst [vmem:[#allocation2 + $0x10] sm:$0xff] %v1294_v55  ;;  %v1295_v27 = vadd.f32 %v2033_v26, %v1134_v63  ;;  %v1232_v19 = vpop.f32.mrb[19].mxu1 }
 0x54f   : > { %1308 = vst [vmem:[#allocation2] sm:$0xff] %v1292_v25  ;;  %v1293_v28 = vadd.f32 %v1232_v19, %v1132_v24 }
 0x550   : > { %1311 = vst [vmem:[#allocation2 + $0x18] sm:$0xff] %v1295_v27 }
 0x551   : > { %1309 = vst [vmem:[#allocation2 + $0x8] sm:$0xff] %v1293_v28 }
 0x553   : > { %v2036_v21 = vpop.f32.mrb[20].mxu1 }
 0x554   : > { %v1298_v22 = vadd.f32 %v2036_v21, %v1137_v20  ;;  %v1245_v23 = vpop.f32.mrb[21].mxu1 }
 0x555   : > { %v1296_v32 = vadd.f32 %v1245_v23, %v1135_v52  ;;  %v2037_v33 = vpop.f32.mrb[22].mxu1  ;;  %v1330_v34 = vld [vmem:[#allocation2 + $0x10] sm:$0xff] (!%p1766_p9) }
 0x556   : > { %1314 = vst [vmem:[#allocation2 + $0x30] sm:$0xff] %v1298_v22  ;;  %v1299_v35 = vadd.f32 %v2037_v33, %v1138_v54  ;;  %v1248_v36 = vpop.f32.mrb[23].mxu1  ;;  %v1328_v47 = vld [vmem:[#allocation2] sm:$0xff] (!%p1766_p9) }
 0x557   : > { %1312 = vst [vmem:[#allocation2 + $0x20] sm:$0xff] %v1296_v32  ;;  %v1297_v39 = vadd.f32 %v1248_v36, %v1136_v30  ;;  %v1331_v37 = vld [vmem:[#allocation2 + $0x18] sm:$0xff] (!%p1766_p9) }
 0x558   : > { %1315 = vst [vmem:[#allocation2 + $0x38] sm:$0xff] %v1299_v35  ;;  %v1329_v48 = vld [vmem:[#allocation2 + $0x8] sm:$0xff] (!%p1766_p9)  ;;  %v1874_v59 = vpack.c.bf16 (!%p1766_p9), %v1331_v37, %v1330_v34 }
 0x559   : > { %1313 = vst [vmem:[#allocation2 + $0x28] sm:$0xff] %v1297_v39  ;;  %v1869_v50 = vpack.c.bf16 (!%p1766_p9), %v1329_v48, %v1328_v47 }
 0x55a   : > { %1913 = vst [vmem:[%s3405_s25 + $0x8] sm:$0xff] (!%p1766_p9), %v1874_v59  }
 0x55b   : > { %v2040_v43 = vpop.f32.mrb[24].mxu1  ;;  %1870 = vst [vmem:[%s3405_s25] sm:$0xff] (!%p1766_p9), %v1869_v50  }
 0x55c   : > { %v1302_v1 = vadd.f32 %v2040_v43, %v1141_v41  ;;  %v1261_v2 = vpop.f32.mrb[25].mxu1 }
 0x55d   : > { %v1300_v4 = vadd.f32 %v1261_v2, %v1139_v42  ;;  %v2041_v5 = vpop.f32.mrb[26].mxu1  ;;  %v1334_v51 = vld [vmem:[#allocation2 + $0x30] sm:$0xff] (!%p1766_p9) }
 0x55e   : > { %1318 = vst [vmem:[#allocation2 + $0x50] sm:$0xff] %v1302_v1  ;;  %v1303_v6 = vadd.f32 %v2041_v5, %v1142_v0  ;;  %v1264_v7 = vpop.f32.mrb[27].mxu1  ;;  %v1332_v56 = vld [vmem:[#allocation2 + $0x20] sm:$0xff] (!%p1766_p9) }
 0x55f   : > { %1316 = vst [vmem:[#allocation2 + $0x40] sm:$0xff] %v1300_v4  ;;  %v1301_v8 = vadd.f32 %v1264_v7, %v1140_v3  ;;  %v1335_v46 = vld [vmem:[#allocation2 + $0x38] sm:$0xff] (!%p1766_p9) }
 0x560   : > { %1319 = vst [vmem:[#allocation2 + $0x58] sm:$0xff] %v1303_v6  ;;  %v1333_v49 = vld [vmem:[#allocation2 + $0x28] sm:$0xff] (!%p1766_p9)  ;;  %v1884_v61 = vpack.c.bf16 (!%p1766_p9), %v1335_v46, %v1334_v51 }
 0x561   : > { %1317 = vst [vmem:[#allocation2 + $0x48] sm:$0xff] %v1301_v8  ;;  %v1879_v44 = vpack.c.bf16 (!%p1766_p9), %v1333_v49, %v1332_v56 }
 0x562   : > { %1915 = vst [vmem:[%s3405_s25 + $0x18] sm:$0xff] (!%p1766_p9), %v1884_v61  }
 0x563   : > { %v2044_v11 = vpop.f32.mrb[28].mxu1  ;;  %1327 = sbr.rel (%p1766_p9) target bundleno = 1396 (0x574), region = 68  ;;  %1914 = vst [vmem:[%s3405_s25 + $0x10] sm:$0xff] (!%p1766_p9), %v1879_v44  }
 0x564   : > { %v1306_v13 = vadd.f32 %v2044_v11, %v1145_v9  ;;  %v1277_v14 = vpop.f32.mrb[29].mxu1 }
 0x565   : > { %v1304_v31 = vadd.f32 %v1277_v14, %v1143_v10  ;;  %v2045_v38 = vpop.f32.mrb[30].mxu1  ;;  %v1338_v57 = vld [vmem:[#allocation2 + $0x50] sm:$0xff] (!%p1766_p9) }
 0x566   : > { %1322 = vst [vmem:[#allocation2 + $0x70] sm:$0xff] %v1306_v13  ;;  %v1307_v40 = vadd.f32 %v2045_v38, %v1146_v12  ;;  %v1280_v29 = vpop.f32.mrb[31].mxu1  ;;  %v1336_v60 = vld [vmem:[#allocation2 + $0x40] sm:$0xff] (!%p1766_p9) }
 0x567   : > { %1320 = vst [vmem:[#allocation2 + $0x60] sm:$0xff] %v1304_v31  ;;  %v1305_v45 = vadd.f32 %v1280_v29, %v1144_v15  ;;  %v1339_v53 = vld [vmem:[#allocation2 + $0x58] sm:$0xff] (!%p1766_p9) }
 0x568   : > { %1323 = vst [vmem:[#allocation2 + $0x78] sm:$0xff] %v1307_v40  ;;  %v1337_v62 = vld [vmem:[#allocation2 + $0x48] sm:$0xff] (!%p1766_p9)  ;;  %v1894_v17 = vpack.c.bf16 (!%p1766_p9), %v1339_v53, %v1338_v57 }
 0x569   : > { %1321 = vst [vmem:[#allocation2 + $0x68] sm:$0xff] %v1305_v45  ;;  %v1889_v58 = vpack.c.bf16 (!%p1766_p9), %v1337_v62, %v1336_v60 }
 0x56a   : > { %1917 = vst [vmem:[%s3405_s25 + $0x28] sm:$0xff] %v1894_v17  }
 0x56b   : > { %1916 = vst [vmem:[%s3405_s25 + $0x20] sm:$0xff] %v1889_v58  }
 0x56d   : > { %v1342_v55 = vld [vmem:[#allocation2 + $0x70] sm:$0xff] }
 0x56e   : > { %v1340_v18 = vld [vmem:[#allocation2 + $0x60] sm:$0xff] }
 0x56f   : > { %v1343_v24 = vld [vmem:[#allocation2 + $0x78] sm:$0xff] }
 0x570   : > { %v1341_v63 = vld [vmem:[#allocation2 + $0x68] sm:$0xff]  ;;  %v1904_v25 = vpack.c.bf16 %v1343_v24, %v1342_v55 }
 0x571   : > { %v1899_v16 = vpack.c.bf16 %v1341_v63, %v1340_v18 }
 0x572   : > { %1919 = vst [vmem:[%s3405_s25 + $0x38] sm:$0xff] %v1904_v25  }
 0x573   : > { %1918 = vst [vmem:[%s3405_s25 + $0x30] sm:$0xff] %v1899_v16  }
 0x574 PF: > { %s3755_s5 = sld [smem:[#allocation27_spill]]  ;;  %s3756_s7 = sld [smem:[#allocation28_spill]] }
 0x575   : > { %s3757_s21 = sld [smem:[#allocation35_spill]]  ;;  %s1445_s28 = sshll.u32 %s3405_s25, 4  ;;  %s3494_s28 = int_to_ptr.vmem [resolvable:$true] %s1445_s28 }
 0x576   : > { %s3758_s1 = sld [smem:[#allocation45_spill]]  ;;  %s1425_s9 = scalar_lea.sflag [#allocation5], %s3208_s16 }
 0x577   : > { %s2485_s22 = scalar_lea.vmem %s3494_s28, 1024  ;;  %s2724_s25 = smov [#allocation12]  }
 0x578   : > { %p2486_p10 = scmp.ne.s32.totalorder %s3494_s28, %s2485_s22  ;;  %s2489_s4 = sshll.u32 %s2724_s25, 4  ;;  %s2490_s4 = int_to_ptr.vmem [resolvable:$false] %s2489_s4 }
 0x579   : > { %p2492_p1 = scmp.lt.s32.totalorder %s3494_s28, %s2490_s4 }
 0x57a   : > { %s1785_s30 = sshll.u32 %s3755_s5, 4  ;;  %s1786_s24 = sshll.u32 %s3756_s7, 5 }
 0x57b   : > { %s3492_s27 = sadd.s32 %s1786_s24, %s1785_s30  ;;  %p3759_p5 = scmp.ne.s32.totalorder %s3757_s21, 0 }
 0x57c   : > { %s1787_s10 = sshll.u32 %s3492_s27, 6  ;;  %s2491_s5 = scalar_lea.vmem %s2490_s4, 2048 }
 0x57d   : > { %s3502_s6 = scalar_lea.hbm %s3758_s1, %s1787_s10  ;;  %p2487_p8 = pnand %p2486_p10, %p3759_p5 }
 0x57e   : > { %p2493_p3 = scmp.lt.s32.totalorder %s2491_s5, %s2485_s22 }
 0x57f   : > { %p2488_p13 = pneg %p2487_p8 }
 0x580   : > { %p2494_p6 = por %p2493_p3, %p2492_p1 }
 0x582   : > { %p2495_p7 = pnand %p2494_p6, %p2488_p13 }
 0x584   : > { %2498 = shalt.err (!%p2495_p7)
}
 0x585   : > { %s2499_s7 = scalar_lea.hbm %s3502_s6, 1024  ;;  %s2503_s18 = scalar_lea.hbm %s3758_s1, 4096 }
 0x586   : > { %p2500_p12 = scmp.ne.s32.totalorder %s3502_s6, %s2499_s7  ;;  %p2504_p2 = scmp.lt.u32.totalorder %s3502_s6, %s3758_s1 }
 0x587   : > { %p2505_p0 = scmp.lt.u32.totalorder %s2503_s18, %s2499_s7  ;;  %p2507_p10 = scmp.lt.u32.totalorder %s2499_s7, %s3502_s6 }
 0x588   : > { %p2501_p4 = pnand %p2500_p12, %p3759_p5 }
 0x589   : > { %p2506_p9 = por %p2505_p0, %p2504_p2 }
 0x58a   : > { %p2502_p11 = pneg %p2501_p4 }
 0x58b   : > { %p2508_p8 = por %p2507_p10, %p2506_p9 }
 0x58d   : > { %p2509_p13 = pnand %p2508_p8, %p2502_p11 }
 0x58f   : > { %2512 = shalt.err (!%p2509_p13)
}
 0x590   : > { %s2725_s22 = smov 64   ;;  %s2726_s4 = smov 4  }
 0x591   : > { %2066 = dma.vmem_to_hbm [thread:$0]  (%p3759_p5), %s3494_s28, 1024, %s3502_s6, %s1425_s9, %s2725_s22, %s2725_s22, %s2726_s4  }
 0x592   : > { %s3760_s30 = sld [smem:[#allocation46_spill]]  ;;  %s1463_s11 = sshll.u32 %s3409_s14, 4  ;;  %s3539_s11 = int_to_ptr.vmem [resolvable:$true] %s1463_s11 }
 0x593   : > { %s1430_s25 = scalar_lea.sflag [#allocation14], %s3208_s16  ;;  %s2513_s0 = scalar_lea.vmem %s3539_s11, 1024 }
 0x594   : > { %p2514_p1 = scmp.ne.s32.totalorder %s3539_s11, %s2513_s0  ;;  %s2727_s1 = smov [#allocation13]  }
 0x595   : > { %s2517_s28 = sshll.u32 %s2727_s1, 4  ;;  %s2518_s28 = int_to_ptr.vmem [resolvable:$false] %s2517_s28 }
 0x596   : > { %p2515_p3 = pnand %p2514_p1, %p3759_p5  ;;  %s2519_s27 = scalar_lea.vmem %s2518_s28, 2048 }
 0x597   : > { %p2520_p7 = scmp.lt.s32.totalorder %s3539_s11, %s2518_s28  ;;  %p2521_p12 = scmp.lt.s32.totalorder %s2519_s27, %s2513_s0 }
 0x598   : > { %s3761_s18 = smov %s3760_s30  ;;  %s3536_s24 = scalar_lea.hbm %s3760_s30, %s1787_s10 }
 0x599   : > { %p2516_p6 = pneg %p2515_p3  ;;  %p2522_p4 = por %p2521_p12, %p2520_p7 }
 0x59b   : > { %p2523_p11 = pnand %p2522_p4, %p2516_p6 }
 0x59d   : > { %2526 = shalt.err (!%p2523_p11)
}
 0x59e   : > { %s2527_s14 = scalar_lea.hbm %s3536_s24, 1024  ;;  %s2531_s1 = scalar_lea.hbm %s3761_s18, 4096 }
 0x59f   : > { %p2528_p2 = scmp.ne.s32.totalorder %s3536_s24, %s2527_s14  ;;  %p2532_p10 = scmp.lt.u32.totalorder %s3536_s24, %s3761_s18 }
 0x5a0   : > { %p2533_p8 = scmp.lt.u32.totalorder %s2531_s1, %s2527_s14  ;;  %p2535_p1 = scmp.lt.u32.totalorder %s2527_s14, %s3536_s24 }
 0x5a1   : > { %p2529_p0 = pnand %p2528_p2, %p3759_p5 }
 0x5a2   : > { %p2534_p13 = por %p2533_p8, %p2532_p10 }
 0x5a3   : > { %p2530_p9 = pneg %p2529_p0 }
 0x5a4   : > { %p2536_p3 = por %p2535_p1, %p2534_p13 }
 0x5a6   : > { %p2537_p6 = pnand %p2536_p3, %p2530_p9 }
 0x5a8   : > { %2540 = shalt.err (!%p2537_p6)
}
 0x5a9   : > { %2067 = dma.vmem_to_hbm [thread:$0]  (%p3759_p5), %s3539_s11, 1024, %s3536_s24, %s1430_s25, %s2725_s22, %s2725_s22, %s2726_s4  }
 0x5aa PF: > { %s3762_s0 = sld [smem:[#allocation21_spill]]  ;;  %s3763_s7 = sld [smem:[#allocation36_spill]] }
 0x5ab   : > { %p2097_p7 = scmp.ge.s32.totalorder %s2715_s15, 2 }
 0x5b0   : > { %s1478_s30 = sand.u32 1, %s3762_s0   ;;  %p3764_p12 = scmp.ne.s32.totalorder %s3763_s7, 0 }
 0x5b1   : > { %s1479_s28 = scalar_lea.sflag [#allocation5], %s1478_s30 }
 0x5b2   : > { %p2088_p4 = pnand %p2097_p7, %p3764_p12 }
 0x5b4   : > { %2634 = dma.done.wait (!%p2088_p4), %s1479_s28, 1024  }
 0x5b5   : > { %2636 = vsyncadd (!%p2088_p4), %s1479_s28, 4294966272  ;;  %s1488_s21 = scalar_lea.sflag [#allocation14], %s1478_s30 }
 0x5b6   : > { %2638 = dma.done.wait (!%p2088_p4), %s1488_s21, 1024  }
 0x5b7   : > { %2640 = vsyncadd (!%p2088_p4), %s1488_s21, 4294966272  ;;  %s32_s15 = sadd.s32 1, %s2715_s15   ;;  %s3766_s21 = sld [smem:[#allocation22_spill]] }
 0x5b8   : > { %p3573_p11 = scmp.ge.s32.totalorder %s32_s15, 18   ;;  %s3767_s24 = sld [smem:[#allocation23_spill]] }
 0x5b9   : > { %s3768_s27 = sld [smem:[#allocation24_spill]]  ;;  %s3769_s30 = sld [smem:[#allocation25_spill]] }
 0x5ba   : > { %s3770_s10 = sld [smem:[#allocation29_spill]]  ;;  %s3771_s11 = sld [smem:[#allocation30_spill]] }
 0x5bb   : > { %s3772_s4 = sld [smem:[#allocation38_spill]]  ;;  %s3773_s14 = sld [smem:[#allocation39_spill]] }
 0x5bc   : > { %s3774_s22 = smov %s2651_s23  ;;  %s3775_s6 = sld [smem:[#allocation40_spill]] }
 0x5bd   : > { %s3776_s23 = smov %s3043_s20  ;;  %s3777_s25 = smov %s2663_s26 }
 0x5be   : > { %s3778_s26 = smov %s3127_s19  ;;  %s3779_s28 = smov %s2675_s29 }
 0x5bf   : > { %s3780_s29 = smov %s3035_s13  ;;  %s3781_s7 = smov %s2687_s8 }
 0x5c0   : > { %s3782_s8 = smov %s3038_s3  ;;  %s3783_s9 = smov %s2703_s12 }
 0x5c1   : > { %s3784_s12 = smov %s3772_s4  ;;  %s3785_s13 = smov %s3773_s14 }
 0x5c2   : > { %s3786_s14 = smov %s3775_s6  ;;  %31 = sbr.rel (!%p3573_p11) target bundleno = 26 (0x1a), region = 151 }
 0x5c9   :  { %1493 = vsyncpa [#allocation4], 1 }
 0x5ca   :  { %1495 = vsyncpa [#allocation4 + $0x1], 1 }
 0x5cb   :  { %1496 = vsyncpa [#allocation7], 1 }
 0x5cc   :  { %1498 = vsyncpa [#allocation7 + $0x1], 1 }
 0x5cd   :  { %1499 = vsyncpa [#allocation10], 1 }
 0x5ce   :  { %1501 = vsyncpa [#allocation10 + $0x1], 1 }
 0x5cf   :  { %1502 = vsyncpa [#allocation5], 1 }
 0x5d0   :  { %1504 = vsyncpa [#allocation5 + $0x1], 1 }
 0x5d1   :  { %1505 = vsyncpa [#allocation14], 1 }
 0x5d2   :  { %1507 = vsyncpa [#allocation14 + $0x1], 1 }

</bundles_post_ra>
